<compile_context>
chip_gen: v7x
topology: tpu7x:2x2x1
jax: 0.10.0
libtpu: 0.0.40
codegen_flags: <defaults>
</compile_context>

<pallas_src>
import functools

import jax
import jax.numpy as jnp
from jax import lax
from jax.experimental import pallas as pl
from jax.experimental.pallas import tpu as pltpu


# Padding value for unused feature lanes: relu(-1e4) = 0, log1p(exp(-1e4)) = 0,
# and (-1e4) * 0 = 0 in the matmul (window padding is 0) -> padding is inert.
_NEG_PAD = -1.0e4


def _shift_err_kernel(x_ref, w_ref, err_ref, *, inv_k):
    """Per-batch-element shift-error row.

    x_ref:   (1, K_pad)      flattened logits for this batch element   (VMEM)
    w_ref:   (K_pad, S_pad)  im2col'd target windows (features x shifts) (VMEM)
    err_ref: (1, S_pad)      per-shift BCE-with-logits mean             (VMEM)

    BCE(x, w) = relu(x) - x*w + log1p(exp(-|x|)), mean over the K real features:
      err[s] = (const - cross[s]) / K
      const  = sum_k relu(x_k) + log1p(exp(-|x_k|))   (shift independent, hoisted)
      cross  = x @ W                                   (single MXU matmul)
    """
    x = x_ref[...]                                                  # (1, K_pad) f32
    const = jnp.sum(
        jnp.maximum(x, 0.0) + jnp.log1p(jnp.exp(-jnp.abs(x))),
        axis=-1, keepdims=True)                                     # (1, 1)
    cross = jnp.dot(
        x, w_ref[...],
        preferred_element_type=jnp.float32,
        precision=lax.Precision.HIGHEST)                            # (1, S_pad) MXU
    err_ref[...] = (const - cross) * inv_k


def shift_invariant_loss(inputs, targets):
    """Pallas implementation of ShiftInvariantLoss.forward.

    Returns (total_loss: scalar f32, adjusted_labels: (B, C, N1, N2) f32).
    """
    B, C, N1, N2 = inputs.shape
    Bt, Ct, M1, M2 = targets.shape
    assert (B, C) == (Bt, Ct) and M1 >= N1 and M2 >= N2
    shift1 = M1 - N1 + 1
    shift2 = M2 - N2 + 1
    S = shift1 * shift2
    K = C * N1 * N2

    # Lane-dense padded extents (last dims multiples of 128 -> unmasked vld/vst).
    K_pad = ((K + 127) // 128) * 128
    S_pad = ((S + 127) // 128) * 128

    x32 = inputs.astype(jnp.float32)
    t32 = targets.astype(jnp.float32)
    # NOTE: on v6e/v7x x could stay bf16 through the elementwise path with f32
    # accumulation; kept f32 here for v5e portability and bit-stable argmin.

    # ---- wrapper-side layout plumbing (no math) ----------------------------
    # Flattened logits: (B, 1, K_pad); padded feature lanes carry an inert value.
    x_flat = x32.reshape(B, 1, K)
    if K_pad != K:
        x_flat = jnp.pad(x_flat, ((0, 0), (0, 0), (0, K_pad - K)),
                         constant_values=_NEG_PAD)

    # im2col of the target: all S candidate N1 x N2 windows, flattened to K
    # features, laid out as (B, K_pad, S_pad). Shift index s = i*shift2 + j
    # matches the PyTorch loop ordering.
    wins = []
    for i in range(shift1):
        for j in range(shift2):
            wins.append(t32[:, :, i:i + N1, j:j + N2].reshape(B, K))
    win_t = jnp.stack(wins, axis=-1)                                # (B, K, S)
    win_t = jnp.pad(win_t, ((0, 0), (0, K_pad - K), (0, S_pad - S)))

    kernel = functools.partial(_shift_err_kernel, inv_k=1.0 / K)

    err3 = pl.pallas_call(
        kernel,
        out_shape=jax.ShapeDtypeStruct((B, 1, S_pad), jnp.float32),
        grid=(B,),
        in_specs=[
            pl.BlockSpec((None, 1, K_pad), lambda b: (b, 0, 0)),
            pl.BlockSpec((None, K_pad, S_pad), lambda b: (b, 0, 0)),
        ],
        out_specs=pl.BlockSpec((None, 1, S_pad), lambda b: (b, 0, 0)),
        compiler_params=pltpu.CompilerParams(
            # Batch rows are independent -> pipelined and split across the two
            # TensorCores on v7x; plain sequential pipelining on v5e/v6e.
            dimension_semantics=("parallel",),
        ),
    )(x_flat, win_t)

    err = err3[:, 0, :S]                                            # (B, S)

    # Epilogue (glue): min/argmin over shifts, sum of per-sample minima, and
    # gather of the best-aligned target window per sample.
    min_loss = jnp.min(err, axis=1)
    min_ij = jnp.argmin(err, axis=1)
    total_loss = jnp.sum(min_loss)

    i_idx = min_ij // shift2
    j_idx = min_ij % shift2

    def _gather_one(t_b, i, j):
        return lax.dynamic_slice(t_b, (0, i, j), (C, N1, N2))

    adjusted_labels = jax.vmap(_gather_one)(t32, i_idx, j_idx)
    return total_loss, adjusted_labels


def _reference(inputs, targets):
    """Pure-JAX reference mirroring the PyTorch loop semantics."""
    B, C, N1, N2 = inputs.shape
    M1, M2 = targets.shape[-2:]
    shift1 = M1 - N1 + 1
    shift2 = M2 - N2 + 1
    x = inputs.astype(jnp.float32)
    errs = []
    wins = []
    for i in range(shift1):
        for j in range(shift2):
            w = targets[:, :, i:i + N1, j:j + N2].astype(jnp.float32)
            bce = jnp.maximum(x, 0.0) - x * w + jnp.log1p(jnp.exp(-jnp.abs(x)))
            errs.append(jnp.mean(bce, axis=(1, 2, 3)))
            wins.append(w)
    err = jnp.stack(errs, axis=1)                       # (B, S)
    cand = jnp.stack(wins, axis=0)                      # (S, B, C, N1, N2)
    min_loss = jnp.min(err, axis=1)
    min_ij = jnp.argmin(err, axis=1)
    total = jnp.sum(min_loss)
    adjusted = cand[min_ij, jnp.arange(B)]
    return total, adjusted


if __name__ == "__main__":
    key = jax.random.PRNGKey(0)
    k1, k2 = jax.random.split(key)

    B, C, N, M = 2, 4, 16, 20  # shift1 = shift2 = 5, S = 25, K = 1024
    inputs = jax.random.normal(k1, (B, C, N, N), dtype=jnp.float32)
    targets = (jax.random.uniform(k2, (B, C, M, M)) > 0.5).astype(jnp.float32)

    total_loss, adjusted = shift_invariant_loss(inputs, targets)
    jax.block_until_ready((total_loss, adjusted))

    ref_total, ref_adjusted = _reference(inputs, targets)
    assert jnp.allclose(total_loss, ref_total, rtol=1e-4, atol=1e-4), (
        total_loss, ref_total)
    assert jnp.allclose(adjusted, ref_adjusted)
    assert adjusted.shape == (B, C, N, N) and adjusted.dtype == jnp.float32

    print("KERNEL_OK")
</pallas_src>

<mosaic_0001>
module attributes {stable_mosaic.version = 11 : i64} {
  func.func @_shift_err_kernel(%arg0: i32, %arg1: memref<1x1x1024xf32, #tpu.memory_space<vmem>>, %arg2: memref<1x1024x128xf32, #tpu.memory_space<vmem>>, %arg3: memref<1x1x128xf32, #tpu.memory_space<vmem>>) attributes {dimension_semantics = [#tpu.dimension_semantics<parallel>], iteration_bounds = array<i64: 2>, scalar_prefetch = 0 : i64, scratch_operands = 0 : i64, tpu.core_type = #tpu.core_type<tc>, window_params = [{transform_indices = @transform_0, window_bounds = array<i64: 1, 1, 1024>}, {transform_indices = @transform_1, window_bounds = array<i64: 1, 1024, 128>}, {transform_indices = @transform_2, window_bounds = array<i64: 1, 1, 128>}]} {
    %c0 = arith.constant 0 : index
    %c0_0 = arith.constant 0 : index
    %c0_1 = arith.constant 0 : index
    %0 = vector.load %arg1[%c0, %c0_0, %c0_1] : memref<1x1x1024xf32, #tpu.memory_space<vmem>>, vector<1x1x1024xf32>
    %1 = vector.shape_cast %0 : vector<1x1x1024xf32> to vector<1x1024xf32>
    %cst = arith.constant 0.000000e+00 : f32
    %2 = vector.broadcast %cst : f32 to vector<1x1024xf32>
    %3 = arith.maximumf %1, %2 : vector<1x1024xf32>
    %4 = math.absf %1 : vector<1x1024xf32>
    %cst_2 = arith.constant 0.000000e+00 : f32
    %5 = vector.broadcast %cst_2 : f32 to vector<1x1024xf32>
    %6 = arith.subf %5, %4 : vector<1x1024xf32>
    %7 = math.exp %6 : vector<1x1024xf32>
    %8 = math.log1p %7 : vector<1x1024xf32>
    %9 = arith.addf %3, %8 : vector<1x1024xf32>
    %cst_3 = arith.constant dense<0.000000e+00> : vector<1xf32>
    %10 = vector.multi_reduction <add>, %9, %cst_3 [1] : vector<1x1024xf32> to vector<1xf32>
    %11 = vector.shape_cast %10 : vector<1xf32> to vector<1x1xf32>
    %c0_4 = arith.constant 0 : index
    %c0_5 = arith.constant 0 : index
    %c0_6 = arith.constant 0 : index
    %12 = vector.load %arg2[%c0_4, %c0_5, %c0_6] : memref<1x1024x128xf32, #tpu.memory_space<vmem>>, vector<1x1024x128xf32>
    %13 = vector.shape_cast %12 : vector<1x1024x128xf32> to vector<1024x128xf32>
    %cst_7 = arith.constant dense<0.000000e+00> : vector<1x128xf32>
    %14 = tpu.matmul %1, %13, %cst_7 {dimension_numbers = #tpu.dot_dimension_numbers<[1], [0], [0], [1], [0, 0, 1, 1], [], []>, precision = #tpu.contract_precision<fp32>} : vector<1x1024xf32>, vector<1024x128xf32>, vector<1x128xf32> -> vector<1x128xf32>
    %15 = vector.broadcast %11 : vector<1x1xf32> to vector<1x128xf32>
    %16 = arith.subf %15, %14 : vector<1x128xf32>
    %cst_8 = arith.constant 9.765625E-4 : f32
    %17 = vector.broadcast %cst_8 : f32 to vector<1x128xf32>
    %18 = arith.mulf %16, %17 : vector<1x128xf32>
    %c0_9 = arith.constant 0 : index
    %c0_10 = arith.constant 0 : index
    %c0_11 = arith.constant 0 : index
    %19 = vector.load %arg3[%c0_9, %c0_10, %c0_11] : memref<1x1x128xf32, #tpu.memory_space<vmem>>, vector<1x1x128xf32>
    %20 = vector.shape_cast %19 : vector<1x1x128xf32> to vector<1x128xf32>
    %21 = vector.shape_cast %18 : vector<1x128xf32> to vector<1x1x128xf32>
    tpu.vector_store %arg3[%c0_9, %c0_10, %c0_11], %21 {strides = array<i32>} : memref<1x1x128xf32, #tpu.memory_space<vmem>>, vector<1x1x128xf32>,
    return
  }
  func.func @transform_0(%arg0: i32) -> (i32, i32, i32) {
    %c0_i32 = arith.constant 0 : i32
    %c0_i32_0 = arith.constant 0 : i32
    %c0_i32_1 = arith.constant 0 : i32
    return %arg0, %c0_i32, %c0_i32_0 : i32, i32, i32
  }
  func.func @transform_1(%arg0: i32) -> (i32, i32, i32) {
    %c0_i32 = arith.constant 0 : i32
    %c0_i32_0 = arith.constant 0 : i32
    %c0_i32_1 = arith.constant 0 : i32
    return %arg0, %c0_i32, %c0_i32_0 : i32, i32, i32
  }
  func.func @transform_2(%arg0: i32) -> (i32, i32, i32) {
    %c0_i32 = arith.constant 0 : i32
    %c0_i32_0 = arith.constant 0 : i32
    %c0_i32_1 = arith.constant 0 : i32
    return %arg0, %c0_i32, %c0_i32_0 : i32, i32, i32
  }
}

</mosaic_0001>

<bundles_post_ra>
// kernel: tpu_custom_call.1
= control target key start
LH: loop header
LB: loop body
LE: loop exit
PB: predicated region body
PF: predicated region fallthrough
CT: control target
= control target key end

     0   :  { %7 = vsyncpa [#allocation3], 0  ;;  %s8261_s0 = inlined_call_operand.hbm [shape: f32[2,1,1024], index: 0, kind: input, shape index: {}]   ;;  %s8262_s1 = inlined_call_operand.hbm [shape: f32[2,1024,128], index: 1, kind: input, shape index: {}]   ;;  %s8263_s2 = inlined_call_operand.hbm [shape: f32[2,1,128], index: 2, kind: output, shape index: {}]  }
   0x1   :  { %9 = vsyncpa [#allocation3 + $0x1], 0 }
   0x2   :  { %10 = vsyncpa [#allocation6], 0 }
   0x3   :  { %12 = vsyncpa [#allocation6 + $0x1], 0 }
   0x4   :  { %13 = vsyncpa [#allocation4], 0 }
   0x5   :  { %15 = vsyncpa [#allocation4 + $0x1], 0  ;;  %s5832_s9 = smov 0   ;;  %s5834_s10 = smov 0  }
   0x6   :  { %s5836_s11 = smov 0   ;;  %s5838_s12 = smov 0  }
   0x7 LB: > { %s5853_s13 = sadd.s32 4294967295, %s5810_s12   ;;  %s3996_s14 = sadd.s32 4294967294, %s5810_s12   ;;  %s5810_s12 = sphi %s5838_s12, %s8864_s12   ;;  %s5806_s11 = sphi %s5836_s11, %s8863_s11   ;;  %s5802_s10 = sphi %s5834_s10, %s8862_s10   ;;  %s5798_s9 = sphi %s5832_s9, %s8861_s9  }
   0x8   : > { %s5857_s15 = sadd.s32 1, %s5810_s12   ;;  %s28_s16 = sadd.s32 1, %s5806_s11 }
   0x9   : > { %s25_s17 = ssub.s32 %s5810_s12, %s5857_s15  ;;  %p35_p0 = scmp.ne.s32.totalorder %s5806_s11, %s5802_s10 }
   0xa   : > { %p26_p1 = scmp.eq.s32.totalorder %s25_s17, 0  ;;  %p36_p2 = scmp.eq.s32.totalorder %s5810_s12, 0 }
   0xb   : > { %p41_p3 = scmp.ne.s32.totalorder %s5802_s10, %s5798_s9  ;;  %p42_p4 = scmp.eq.s32.totalorder %s5853_s13, 0 }
   0xc   : > { %s5869_s18 = scalar_select %p26_p1, %s5806_s11, %s28_s16  }
   0xd   : > { %p5871_p5 = por %p36_p2, %p35_p0  ;;  %p5875_p6 = por %p42_p4, %p41_p3 }
   0xe   : > { %p91_p7 = scmp.eq.s32.totalorder %s5853_s13, 1  ;;  %p97_p8 = scmp.eq.s32.totalorder %s3996_s14, 1 }
   0xf   : > { %s8474_s20 = scalar_select %p5875_p6, 1, 0 }
  0x10   : > { %p5638_p10 = scmp.lt.s32.totalorder %s5810_s12, 2  ;;  %p5882_p11 = por %p91_p7, %p35_p0 }
  0x11   : > { %p5886_p12 = por %p97_p8, %p41_p3  ;;  %s5891_s23 = sand.u32 1, %s5806_s11  }
  0x12   : > { %s8475_s21 = scalar_select %p5882_p11, 1, 0 }
  0x13   : > { %s8476_s22 = scalar_select %p5886_p12, 1, 0 }
  0x14   : > { %s4011_s24 = sshll.u32 %s5810_s12, 7  ;;  %s3999_s25 = sshll.u32 %s5891_s23, 3 }
  0x15   : > { %s5898_s28 = scalar_lea.hbm %s8261_s0, %s4011_s24  ;;  %s121_s29 = scalar_lea.vmem [#allocation2], %s3999_s25 }
  0x16   : > { %s129_s30 = sshll.u32 %s121_s29, 4  ;;  %p5902_p13 = pnand %p5638_p10, %p5871_p5  ;;  %s5906_s30 = int_to_ptr.vmem [resolvable:$true] %s129_s30 }
  0x17   : > { %s118_s4 = scalar_lea.sflag [#allocation3], %s5891_s23  ;;  %s5680_s5 = scalar_lea.hbm %s5898_s28, 128 }
  0x18   : > { %p5681_p2 = scmp.ne.s32.totalorder %s5898_s28, %s5680_s5  ;;  %p5682_p3 = pneg %p5902_p13 }
  0x19   : > { %s5685_s8 = scalar_lea.hbm %s8261_s0, 256  ;;  %p5686_p5 = scmp.lt.u32.totalorder %s5898_s28, %s8261_s0 }
  0x1a   : > { %p5683_p4 = pnand %p5682_p3, %p5681_p2  ;;  %p5687_p8 = scmp.lt.u32.totalorder %s5685_s8, %s5680_s5 }
  0x1b   : > { %p5689_p9 = scmp.lt.u32.totalorder %s5680_s5, %s5898_s28 }
  0x1c   : > { %p5684_p7 = pneg %p5683_p4  ;;  %p5688_p10 = por %p5687_p8, %p5686_p5 }
  0x1e   : > { %p5690_p0 = por %p5689_p9, %p5688_p10 }
  0x20   : > { %p5691_p1 = pnand %p5690_p0, %p5684_p7 }
  0x22   : > { %5694 = shalt.err (!%p5691_p1)
}
  0x23   : > { %s5695_s17 = scalar_lea.vmem %s5906_s30, 128  ;;  %s5812_s19 = smov [#allocation2]  }
  0x24   : > { %p5696_p2 = scmp.ne.s32.totalorder %s5906_s30, %s5695_s17  ;;  %s5700_s24 = sshll.u32 %s5812_s19, 4  ;;  %s5701_s24 = int_to_ptr.vmem [resolvable:$false] %s5700_s24 }
  0x25   : > { %s5702_s25 = scalar_lea.vmem %s5701_s24, 256  ;;  %p5703_p11 = scmp.lt.s32.totalorder %s5906_s30, %s5701_s24 }
  0x26   : > { %p5698_p4 = pnand %p5696_p2, %p5682_p3  ;;  %p5704_p5 = scmp.lt.s32.totalorder %s5702_s25, %s5695_s17 }
  0x28   : > { %p5699_p12 = pneg %p5698_p4  ;;  %p5705_p8 = por %p5704_p5, %p5703_p11 }
  0x2a   : > { %p5706_p9 = pnand %p5705_p8, %p5699_p12 }
  0x2c   : > { %5709 = shalt.err (!%p5706_p9)
}
  0x2d   : > { %5630 = dma.hbm_to_vmem [thread:$0]  (!%p5902_p13), %s5898_s28, 128, %s5906_s30, %s118_s4  }
  0x2e   : > { %p8478_p0 = scmp.lt.s32.totalorder %s5810_s12, 3  ;;  %p8479_p1 = scmp.ge.s32.totalorder %s5810_s12, 1 }
  0x2f   : > { %s4002_s27 = sshll.u32 %s5891_s23, 10  ;;  %s4012_s29 = sshll.u32 %s5810_s12, 14 }
  0x30   : > { %p5940_p7 = pnand %p8479_p1, %p8478_p0  ;;  %s5949_s7 = scalar_lea.hbm %s8262_s1, %s4012_s29 }
  0x31   : > { %s140_s8 = scalar_lea.vmem [#allocation5], %s4002_s27  ;;  %s137_s28 = scalar_lea.sflag [#allocation6], %s5891_s23 }
  0x32   : > { %s147_s14 = sshll.u32 %s140_s8, 4  ;;  %s5710_s30 = scalar_lea.hbm %s5949_s7, 16384  ;;  %s5951_s14 = int_to_ptr.vmem [resolvable:$true] %s147_s14 }
  0x33   : > { %p5711_p11 = scmp.ne.s32.totalorder %s5949_s7, %s5710_s30  ;;  %s5715_s17 = scalar_lea.hbm %s8262_s1, 32768 }
  0x34   : > { %p5716_p2 = scmp.lt.u32.totalorder %s5949_s7, %s8262_s1  ;;  %p5717_p4 = scmp.lt.u32.totalorder %s5715_s17, %s5710_s30 }
  0x35   : > { %p5713_p12 = pnand %p5711_p11, %p5682_p3  ;;  %p5719_p8 = scmp.lt.u32.totalorder %s5710_s30, %s5949_s7 }
  0x36   : > { %p5718_p5 = por %p5717_p4, %p5716_p2 }
  0x37   : > { %p5714_p10 = pneg %p5713_p12 }
  0x38   : > { %p5720_p9 = por %p5719_p8, %p5718_p5 }
  0x3a   : > { %p5721_p0 = pnand %p5720_p9, %p5714_p10 }
  0x3c   : > { %5724 = shalt.err (!%p5721_p0)
}
  0x3d   : > { %s5725_s25 = scalar_lea.vmem %s5951_s14, 16384  ;;  %s5813_s27 = smov [#allocation5]  }
  0x3e   : > { %p5726_p1 = scmp.ne.s32.totalorder %s5951_s14, %s5725_s25  ;;  %s5730_s29 = sshll.u32 %s5813_s27, 4  ;;  %s5731_s29 = int_to_ptr.vmem [resolvable:$false] %s5730_s29 }
  0x3f   : > { %s5732_s5 = scalar_lea.vmem %s5731_s29, 32768  ;;  %p5733_p6 = scmp.lt.s32.totalorder %s5951_s14, %s5731_s29 }
  0x40   : > { %p5728_p11 = pnand %p5726_p1, %p5682_p3  ;;  %p5734_p2 = scmp.lt.s32.totalorder %s5732_s5, %s5725_s25 }
  0x42   : > { %p5729_p12 = pneg %p5728_p11  ;;  %p5735_p4 = por %p5734_p2, %p5733_p6 }
  0x44   : > { %p5736_p5 = pnand %p5735_p4, %p5729_p12 }
  0x46   : > { %5739 = shalt.err (!%p5736_p5)
}
  0x47   : > { %s5814_s6 = smov 128   ;;  %s5815_s8 = smov 8  }
  0x48   : > { %5633 = dma.hbm_to_vmem [thread:$0]  (!%p5902_p13), %s5949_s7, 16384, %s5951_s14, %s137_s28, %s5814_s6, %s5814_s6, %s5815_s8  }
  0x49   : > { %159 = sbr.rel (%p5940_p7) target bundleno = 739 (0x2e3), region = 28 }
  0x50   : > { %s5982_s30 = sand.u32 1, %s5802_s10   ;;  %p8481_p6 = scmp.ne.s32.totalorder %s8474_s20, 0 }
  0x51   : > { %s4006_s4 = sshll.u32 %s5982_s30, 3  ;;  %s162_s16 = scalar_lea.sflag [#allocation3], %s5982_s30 }
  0x52   : > { %s5986_s17 = scalar_lea.vmem [#allocation2], %s4006_s4 }
  0x53   : > { %5785 = dma.done.wait (%p8481_p6), %s162_s16, 128  }
  0x54   : > { %5787 = vsyncadd (%p8481_p6), %s162_s16, 4294967168  ;;  %s4007_s23 = sshll.u32 %s5982_s30, 10  ;;  %s171_s3 = scalar_lea.sflag [#allocation6], %s5982_s30 }
  0x55   : > { %s5994_s26 = scalar_lea.vmem [#allocation5], %s4007_s23 }
  0x56   : > { %5789 = dma.done.wait (%p8481_p6), %s171_s3, 16384  }
  0x57   : > { %5791 = vsyncadd (%p8481_p6), %s171_s3, 4294950912  ;;  %v290_v0 = vld [vmem:[%s5994_s26 + $0x80] sm:$0xff]  ;;  %v291_v1 = vld [vmem:[%s5994_s26 + $0x88] sm:$0xff]  ;;  %v216_v3 = vlaneseq  ;;  %vm256_vm1 = vcmask 1040384   ;;  %s4008_s20 = sshll.u32 %s5853_s13, 4  ;;  %s198_s7 = scalar_lea.vmem [#allocation7], %s5982_s30 }
  0x58   : > { %v274_v2 = vld [vmem:[%s5994_s26] sm:$0xff]  ;;  %v492_v4 = vand.u32 4294901760, %v290_v0  ;;  %v495_v5 = vand.u32 4294901760, %v291_v1  ;;  %v275_v6 = vld [vmem:[%s5994_s26 + $0x8] sm:$0xff]  ;;  %v292_v8 = vld [vmem:[%s5994_s26 + $0x90] sm:$0xff]  ;;  %s3907_s14 = sshll.u32 %s198_s7, 4  ;;  %s8217_s24 = scalar_lea.hbm %s8263_s2, %s4008_s20  ;;  %s8219_s14 = int_to_ptr.vmem [resolvable:$true] %s3907_s14 }
  0x59   : > { %v444_v7 = vand.u32 4294901760, %v274_v2  ;;  %v293_v9 = vld [vmem:[%s5994_s26 + $0x98] sm:$0xff]  ;;  %v447_v10 = vand.u32 4294901760, %v275_v6  ;;  %v498_v11 = vand.u32 4294901760, %v292_v8  ;;  %v276_v13 = vld [vmem:[%s5994_s26 + $0x10] sm:$0xff]  ;;  %v294_v19 = vld [vmem:[%s5994_s26 + $0xa0] sm:$0xff] }
  0x5a   : > { %v501_v12 = vand.u32 4294901760, %v293_v9  ;;  %v277_v14 = vld [vmem:[%s5994_s26 + $0x18] sm:$0xff]  ;;  %v6008_v15 = vpack.c.bf16 %v495_v5, %v492_v4  ;;  %v450_v17 = vand.u32 4294901760, %v276_v13  ;;  %v295_v20 = vld [vmem:[%s5994_s26 + $0xa8] sm:$0xff]  ;;  %v278_v24 = vld [vmem:[%s5994_s26 + $0x20] sm:$0xff]  ;;  %v6022_v26 = vshrl.u32 %v216_v3, 7 }
  0x5b   : > { %v6010_v16 = vsub.f32 %v274_v2, %v444_v7  ;;  %v453_v18 = vand.u32 4294901760, %v277_v14  ;;  %v6014_v21 = vpack.c.bf16 %v447_v10, %v444_v7  ;;  %v6016_v22 = vsub.f32 %v275_v6, %v447_v10  ;;  %v279_v25 = vld [vmem:[%s5994_s26 + $0x28] sm:$0xff]  ;;  %v296_v38 = vld [vmem:[%s5994_s26 + $0xb0] sm:$0xff]  ;;  %v297_v41 = vld [vmem:[%s5994_s26 + $0xb8] sm:$0xff]  ;;  %s3895_s25 = scalar_lea.sflag [#allocation4], %s5982_s30  ;;  %s5740_s27 = scalar_lea.vmem %s8219_s14, 16 }
  0x5c   : > { %v6018_v23 = vpack.c.bf16 %v501_v12, %v498_v11  ;;  %8482 = vst [vmem:[#allocation11_spill] sm:$0xff] %v6022_v26  ;;  %4854 = vmatprep.subr.bf16.mxu0 %v6008_v15  ;;  %v6025_v27 = vsub.f32 %v292_v8, %v498_v11  ;;  %v6027_v28 = vsub.f32 %v293_v9, %v501_v12  ;;  %v504_v30 = vand.u32 4294901760, %v294_v19  ;;  %v280_v55 = vld [vmem:[%s5994_s26 + $0x30] sm:$0xff]  ;;  %v281_v56 = vld [vmem:[%s5994_s26 + $0x38] sm:$0xff]  ;;  %v299_v6 = vld [vmem:[%s5994_s26 + $0xc8] sm:$0xff]  ;;  %p5741_p13 = scmp.ne.s32.totalorder %s8219_s14, %s5740_s27  ;;  %p8858_p3 = scmp.ne.s32.totalorder %s8475_s21, 0 }
  0x5d   : > { %v6029_v29 = vpack.c.bf16 %v453_v18, %v450_v17  ;;  %4856 = vmatpush3.bf16.msra.mxu0 %v6014_v21  ;;  %v507_v31 = vand.u32 4294901760, %v295_v20  ;;  %v6032_v32 = vsub.f32 %v290_v0, %v492_v4  ;;  %v6034_v33 = vsub.f32 %v291_v1, %v495_v5  ;;  %v298_v5 = vld [vmem:[%s5994_s26 + $0xc0] sm:$0xff]  ;;  %s5816_s13 = smov [#allocation7]  }
  0x5e   : > { %4858 = vmatprep.subr.bf16.mxu0 %v6018_v23  ;;  %v456_v34 = vand.u32 4294901760, %v278_v24  ;;  %v459_v35 = vand.u32 4294901760, %v279_v25  ;;  %v8279_v36 = vand.u32 4294901760, %v6010_v16  ;;  %v8278_v37 = vand.u32 4294901760, %v6016_v22  ;;  %v282_v11 = vld [vmem:[%s5994_s26 + $0x40] sm:$0xff]  ;;  %p5742_p7 = pnand %p5741_p13, %p8858_p3  ;;  %s5744_s29 = sshll.u32 %s5816_s13, 4  ;;  %s5745_s29 = int_to_ptr.vmem [resolvable:$false] %s5744_s29 }
  0x5f   : > { %v6040_v39 = vpack.c.bf16 %v507_v31, %v504_v30  ;;  %v8282_v40 = vand.u32 4294901760, %v6032_v32  ;;  %v6045_v43 = vsub.f32 %v276_v13, %v450_v17  ;;  %v6047_v44 = vsub.f32 %v277_v14, %v453_v18  ;;  %s5746_s5 = scalar_lea.vmem %s5745_s29, 32  ;;  %p5747_p8 = scmp.lt.s32.totalorder %s8219_s14, %s5745_s29 }
  0x60   : > { %v8280_v45 = vand.u32 4294901760, %v6034_v33  ;;  %v6050_v46 = vpack.c.bf16 %v459_v35, %v456_v34  ;;  %v559_v48 = vsub.f32 %v6010_v16, %v8279_v36  ;;  %v566_v49 = vsub.f32 %v6016_v22, %v8278_v37  ;;  %p5743_p10 = pneg %p5742_p7  ;;  %p5748_p9 = scmp.lt.s32.totalorder %s5746_s5, %s5740_s27 }
  0x61   : > { %4860 = vmatpush3.bf16.msra.mxu0 %v6029_v29  ;;  %v671_v47 = vsub.f32 %v6032_v32, %v8282_v40  ;;  %v510_v50 = vand.u32 4294901760, %v296_v38  ;;  %v513_v52 = vand.u32 4294901760, %v297_v41  ;;  %v8276_v53 = vand.u32 4294901760, %v6025_v27 }
  0x62   : > { %4862 = vmatprep.subr.bf16.mxu0 %v6040_v39  ;;  %v678_v51 = vsub.f32 %v6034_v33, %v8280_v45  ;;  %v8274_v54 = vand.u32 4294901760, %v6027_v28  ;;  %v6070_v57 = vsub.f32 %v294_v19, %v504_v30  ;;  %v560_v59 = vand.u32 4294901760, %v559_v48  ;;  %v304_v45 = vld [vmem:[%s5994_s26 + $0xf0] sm:$0xff]  ;;  %p5749_p0 = por %p5748_p9, %p5747_p8 }
  0x63   : > { %v672_v58 = vand.u32 4294901760, %v671_v47  ;;  %v567_v60 = vand.u32 4294901760, %v566_v49  ;;  %v6072_v61 = vsub.f32 %v295_v20, %v507_v31  ;;  %v6074_v63 = vpack.c.bf16 %v513_v52, %v510_v50  ;;  %v283_v31 = vld [vmem:[%s5994_s26 + $0x48] sm:$0xff] }
  0x64   : > { %v679_v62 = vand.u32 4294901760, %v678_v51  ;;  %v685_v0 = vsub.f32 %v6025_v27, %v8276_v53  ;;  %v692_v2 = vsub.f32 %v6027_v28, %v8274_v54  ;;  %v462_v3 = vand.u32 4294901760, %v280_v55  ;;  %v287_v54 = vld [vmem:[%s5994_s26 + $0x68] sm:$0xff]  ;;  %p5750_p1 = pnand %p5749_p0, %p5743_p10 }
  0x65   : > { %4864 = vmatpush3.bf16.msra.mxu0 %v6050_v46  ;;  %v4887_v1 = vpack.c.bf16 %v567_v60, %v560_v59  ;;  %v465_v4 = vand.u32 4294901760, %v281_v56  ;;  %v8272_v9 = vand.u32 4294901760, %v6045_v43  ;;  %v8270_v10 = vand.u32 4294901760, %v6047_v44 }
  0x66   : > { %v4885_v7 = vpack.c.bf16 %v679_v62, %v672_v58  ;;  %4866 = vmatprep.subr.bf16.mxu0 %v6074_v63  ;;  %v686_v8 = vand.u32 4294901760, %v685_v0  ;;  %v6089_v12 = vsub.f32 %v278_v24, %v456_v34  ;;  %v6091_v13 = vsub.f32 %v279_v25, %v459_v35  ;;  %v300_v0 = vld [vmem:[%s5994_s26 + $0xd0] sm:$0xff] }
  0x67   : > { %v693_v14 = vand.u32 4294901760, %v692_v2  ;;  %v6093_v17 = vpack.c.bf16 %v465_v4, %v462_v3  ;;  %v573_v18 = vsub.f32 %v6045_v43, %v8272_v9  ;;  %v580_v19 = vsub.f32 %v6047_v44, %v8270_v10  ;;  %v284_v2 = vld [vmem:[%s5994_s26 + $0x50] sm:$0xff]  ;;  %v302_v10 = vld [vmem:[%s5994_s26 + $0xe0] sm:$0xff] }
  0x68   : > { %4886 = vmatprep.subr.bf16.mxu1 %v4885_v7  ;;  %v516_v20 = vand.u32 4294901760, %v298_v5  ;;  %v519_v30 = vand.u32 4294901760, %v299_v6  ;;  %v8269_v25 = vand.u32 4294901760, %v6070_v57  ;;  %v8267_v34 = vand.u32 4294901760, %v6072_v61 }
  0x69   : > { %4888 = vmatpush3.bf16.msra.mxu1 %v4887_v1  ;;  %v4889_v24 = vpack.c.bf16 %v693_v14, %v686_v8  ;;  %4868 = vmatpush3.bf16.msra.mxu0 %v6093_v17  ;;  %v468_v35 = vand.u32 4294901760, %v282_v11  ;;  %v6105_v47 = vsub.f32 %v296_v38, %v510_v50  ;;  %v574_v48 = vand.u32 4294901760, %v573_v18  ;;  %v301_v38 = vld [vmem:[%s5994_s26 + $0xd8] sm:$0xff] }
  0x6a   : > { %v581_v49 = vand.u32 4294901760, %v580_v19  ;;  %v6107_v51 = vpack.c.bf16 %v519_v30, %v516_v20  ;;  %v6109_v58 = vsub.f32 %v297_v41, %v513_v52  ;;  %v699_v59 = vsub.f32 %v6070_v57, %v8269_v25 }
  0x6b   : > { %4890 = vmatprep.subr.bf16.mxu1 %v4889_v24  ;;  %v706_v60 = vsub.f32 %v6072_v61, %v8267_v34  ;;  %v471_v62 = vand.u32 4294901760, %v283_v31  ;;  %v6119_v50 = vsub.f32 %v280_v55, %v462_v3  ;;  %v8266_v41 = vand.u32 4294901760, %v6089_v12 }
  0x6c   : > { %v4891_v1 = vpack.c.bf16 %v581_v49, %v574_v48  ;;  %4870 = vmatprep.subr.bf16.mxu0 %v6107_v51  ;;  %v8268_v52 = vand.u32 4294901760, %v6091_v13  ;;  %v6125_v7 = vsub.f32 %v281_v56, %v465_v4  ;;  %v700_v8 = vand.u32 4294901760, %v699_v59  ;;  %v285_v48 = vld [vmem:[%s5994_s26 + $0x58] sm:$0xff] }
  0x6d   : > { %v707_v14 = vand.u32 4294901760, %v706_v60  ;;  %v6127_v18 = vpack.c.bf16 %v471_v62, %v468_v35  ;;  %v587_v55 = vsub.f32 %v6089_v12, %v8266_v41  ;;  %v522_v19 = vand.u32 4294901760, %v300_v0 }
  0x6e   : > { %4892 = vmatpush3.bf16.msra.mxu1 %v4891_v1  ;;  %v594_v3 = vsub.f32 %v6091_v13, %v8268_v52  ;;  %v525_v24 = vand.u32 4294901760, %v301_v38  ;;  %v8271_v4 = vand.u32 4294901760, %v6105_v47  ;;  %v8273_v49 = vand.u32 4294901760, %v6109_v58 }
  0x6f   : > { %v4893_v56 = vpack.c.bf16 %v707_v14, %v700_v8  ;;  %4872 = vmatpush3.bf16.msra.mxu0 %v6127_v18  ;;  %v474_v59 = vand.u32 4294901760, %v284_v2  ;;  %v6139_v60 = vsub.f32 %v298_v5, %v516_v20  ;;  %v588_v1 = vand.u32 4294901760, %v587_v55  ;;  %v303_v5 = vld [vmem:[%s5994_s26 + $0xe8] sm:$0xff] }
  0x70   : > { %v595_v41 = vand.u32 4294901760, %v594_v3  ;;  %v6141_v34 = vpack.c.bf16 %v525_v24, %v522_v19  ;;  %v6143_v52 = vsub.f32 %v299_v6, %v519_v30  ;;  %v713_v8 = vsub.f32 %v6105_v47, %v8271_v4  ;;  %v6159_v3 = vld [vmem:[%s5994_s26 + $0x60] sm:$0xff] }
  0x71   : > { %4894 = vmatprep.subr.bf16.mxu1 %v4893_v56  ;;  %v720_v14 = vsub.f32 %v6109_v58, %v8273_v49  ;;  %v477_v25 = vand.u32 4294901760, %v285_v48  ;;  %v6153_v20 = vsub.f32 %v282_v11, %v468_v35  ;;  %v8275_v6 = vand.u32 4294901760, %v6119_v50 }
  0x72   : > { %8483 = vst [vmem:[#allocation12_spill] sm:$0xff] %v6141_v34  ;;  %v4895_v55 = vpack.c.bf16 %v595_v41, %v588_v1  ;;  %4874 = vmatprep.subr.bf16.mxu0 %v6141_v34  ;;  %v8277_v30 = vand.u32 4294901760, %v6125_v7  ;;  %v6161_v56 = vsub.f32 %v283_v31, %v471_v62  ;;  %v714_v4 = vand.u32 4294901760, %v713_v8 }
  0x73   : > { %v721_v9 = vand.u32 4294901760, %v720_v14  ;;  %v6163_v49 = vpack.c.bf16 %v477_v25, %v474_v59  ;;  %v601_v11 = vsub.f32 %v6119_v50, %v8275_v6  ;;  %v528_v41 = vand.u32 4294901760, %v302_v10 }
  0x74   : > { %4896 = vmatpush3.bf16.msra.mxu1 %v4895_v55  ;;  %v608_v35 = vsub.f32 %v6125_v7, %v8277_v30  ;;  %v531_v1 = vand.u32 4294901760, %v303_v5  ;;  %v8281_v62 = vand.u32 4294901760, %v6139_v60  ;;  %v8283_v8 = vand.u32 4294901760, %v6143_v52 }
  0x75   : > { %8484 = vst [vmem:[#allocation13_spill] sm:$0xff] %v6163_v49  ;;  %v4897_v31 = vpack.c.bf16 %v721_v9, %v714_v4  ;;  %4876 = vmatpush3.bf16.msra.mxu0 %v6163_v49  ;;  %v480_v14 = vand.u32 4294901760, %v6159_v3  ;;  %v6176_v55 = vsub.f32 %v300_v0, %v522_v19  ;;  %v602_v6 = vand.u32 4294901760, %v601_v11  ;;  %v305_v0 = vld [vmem:[%s5994_s26 + $0xf8] sm:$0xff] }
  0x76   : > { %v609_v53 = vand.u32 4294901760, %v608_v35  ;;  %v6178_v30 = vpack.c.bf16 %v531_v1, %v528_v41  ;;  %v6180_v37 = vsub.f32 %v301_v38, %v525_v24  ;;  %v727_v9 = vsub.f32 %v6139_v60, %v8281_v62  ;;  %v288_v35 = vld [vmem:[%s5994_s26 + $0x70] sm:$0xff] }
  0x77   : > { %4898 = vmatprep.subr.bf16.mxu1 %v4897_v31  ;;  %v734_v4 = vsub.f32 %v6143_v52, %v8283_v8  ;;  %v483_v36 = vand.u32 4294901760, %v287_v54  ;;  %v6190_v19 = vsub.f32 %v284_v2, %v474_v59  ;;  %v8286_v38 = vand.u32 4294901760, %v6153_v20  ;;  %v289_v8 = vld [vmem:[%s5994_s26 + $0x78] sm:$0xff] }
  0x78   : > { %8485 = vst [vmem:[#allocation14_spill] sm:$0xff] %v6178_v30  ;;  %v4899_v11 = vpack.c.bf16 %v609_v53, %v602_v6  ;;  %4878 = vmatprep.subr.bf16.mxu0 %v6178_v30  ;;  %v8291_v24 = vand.u32 4294901760, %v6161_v56  ;;  %v6196_v31 = vsub.f32 %v285_v48, %v477_v25  ;;  %v728_v62 = vand.u32 4294901760, %v727_v9 }
  0x79   : > { %v735_v40 = vand.u32 4294901760, %v734_v4  ;;  %v6198_v42 = vpack.c.bf16 %v483_v36, %v480_v14  ;;  %v615_v2 = vsub.f32 %v6153_v20, %v8286_v38  ;;  %v534_v59 = vand.u32 4294901760, %v304_v45 }
  0x7a   : > { %4900 = vmatpush3.bf16.msra.mxu1 %v4899_v11  ;;  %v622_v53 = vsub.f32 %v6161_v56, %v8291_v24  ;;  %v537_v6 = vand.u32 4294901760, %v305_v0  ;;  %v8294_v25 = vand.u32 4294901760, %v6176_v55  ;;  %v8295_v48 = vand.u32 4294901760, %v6180_v37 }
  0x7b   : > { %8486 = vst [vmem:[#allocation15_spill] sm:$0xff] %v6198_v42  ;;  %v4901_v30 = vpack.c.bf16 %v735_v40, %v728_v62  ;;  %4880 = vmatpush3.bf16.msra.mxu0 %v6198_v42  ;;  %v486_v9 = vand.u32 4294901760, %v288_v35  ;;  %v6210_v4 = vsub.f32 %v302_v10, %v528_v41  ;;  %v616_v11 = vand.u32 4294901760, %v615_v2  ;;  %v6226_v2 = vld [vmem:[%s5986_s17] sm:$0xff] }
  0x7c   : > { %v623_v38 = vand.u32 4294901760, %v622_v53  ;;  %v6212_v49 = vpack.c.bf16 %v537_v6, %v534_v59  ;;  %v6214_v34 = vsub.f32 %v303_v5, %v531_v1  ;;  %v741_v40 = vsub.f32 %v6176_v55, %v8294_v25  ;;  %8488 = vst [vmem:[#allocation17_spill] sm:$0xff] %v6226_v2 }
  0x7d   : > { %4902 = vmatprep.subr.bf16.mxu1 %v4901_v30  ;;  %v748_v62 = vsub.f32 %v6180_v37, %v8295_v48  ;;  %v489_v24 = vand.u32 4294901760, %v289_v8  ;;  %v8300_v10 = vand.u32 4294901760, %v6190_v19  ;;  %v8298_v41 = vand.u32 4294901760, %v6196_v31 }
  0x7e   : > { %8487 = vst [vmem:[#allocation16_spill] sm:$0xff] %v6212_v49  ;;  %v4903_v42 = vpack.c.bf16 %v623_v38, %v616_v11  ;;  %4882 = vmatprep.subr.bf16.mxu0 %v6212_v49  ;;  %v6230_v30 = vsub.f32 %v6159_v3, %v480_v14  ;;  %v742_v1 = vand.u32 4294901760, %v741_v40  ;;  %v6234_v48 = vsub.f32 %v287_v54, %v483_v36 }
  0x7f   : > { %v749_v53 = vand.u32 4294901760, %v748_v62  ;;  %v6232_v25 = vpack.c.bf16 %v489_v24, %v486_v9  ;;  %v6236_v38 = vsub.f32 %v304_v45, %v534_v59  ;;  %v629_v11 = vsub.f32 %v6190_v19, %v8300_v10 }
  0x80   : > { %4904 = vmatpush3.bf16.msra.mxu1 %v4903_v42  ;;  %v636_v5 = vsub.f32 %v6196_v31, %v8298_v41  ;;  %v8490_v3 = vsub.s32 1, %v6022_v26  ;;  %v8299_v36 = vand.u32 4294901760, %v6210_v4  ;;  %v8303_v42 = vand.u32 4294901760, %v6214_v34 }
  0x81   : > { %8489 = vst [vmem:[#allocation18_spill] sm:$0xff] %v6232_v25  ;;  %v4905_v49 = vpack.c.bf16 %v749_v53, %v742_v1  ;;  %4884 = vmatpush3.bf16.msra.mxu0 %v6232_v25  ;;  %v6250_v45 = vsub.f32 %v305_v0, %v537_v6  ;;  %v630_v54 = vand.u32 4294901760, %v629_v11  ;;  %v4917_v40 = vpack.c.bf16 %v6034_v33, %v6032_v32 }
  0x82   : > { %v410_v14 = vrot.slane %v6226_v2, %v8490_v3  ;;  %v637_v59 = vand.u32 4294901760, %v636_v5  ;;  %v755_v1 = vsub.f32 %v6210_v4, %v8299_v36  ;;  %v762_v53 = vsub.f32 %v6214_v34, %v8303_v42 }
  0x83   : > { %4906 = vmatprep.subr.bf16.mxu1 %v4905_v49  ;;  %v8491_v3 = vsub.s32 0, %v6022_v26  ;;  %v6265_v6 = vsub.f32 %v288_v35, %v486_v9  ;;  %4918 = vmatprep.subr.bf16.mxu0 %v4917_v40  ;;  %v8305_v49 = vand.u32 4294901760, %v6230_v30  ;;  %v8304_v11 = vand.u32 4294901760, %v6234_v48 }
  0x84   : > { %v6254_v62 = vand.u32 4294901760, %v410_v14  ;;  %v4907_v5 = vpack.c.bf16 %v637_v59, %v630_v54  ;;  %v756_v36 = vand.u32 4294901760, %v755_v1  ;;  %v763_v10 = vand.u32 4294901760, %v762_v53 }
  0x85   : > { %v406_v0 = vrot.slane %v6226_v2, %v8491_v3  ;;  %v6275_v42 = vsub.f32 %v289_v8, %v489_v24  ;;  %v643_v35 = vsub.f32 %v6230_v30, %v8305_v49  ;;  %v650_v9 = vsub.f32 %v6234_v48, %v8304_v11 }
  0x86   : > { %v6270_v41 = vsub.f32 %v410_v14, %v6254_v62  ;;  %780 = vmatprep.mubr.f32.mxu1 %v6254_v62  ;;  %4908 = vmatpush3.bf16.msra.mxu1 %v4907_v5  ;;  %v4909_v54 = vpack.c.bf16 %v763_v10, %v756_v36  ;;  %v8307_v40 = vand.u32 4294901760, %v6236_v38  ;;  %v8306_v24 = vand.u32 4294901760, %v6250_v45 }
  0x87   : > { %v6272_v25 = vand.u32 4294901760, %v406_v0  ;;  %v644_v1 = vand.u32 4294901760, %v643_v35  ;;  %v651_v8 = vand.u32 4294901760, %v650_v9  ;;  %v8311_v10 = vand.u32 4294901760, %v6265_v6 }
  0x88   : > { %v541_v14 = vand.u32 4294901760, %v6270_v41  ;;  %4910 = vmatprep.subr.bf16.mxu1 %v4909_v54  ;;  %v769_v5 = vsub.f32 %v6236_v38, %v8307_v40  ;;  %v663_v35 = vand.u32 4294901760, %v6275_v42  ;;  %v4921_v40 = vpack.c.bf16 %v6027_v28, %v6025_v27 }
  0x89   : > { %v6285_v59 = vsub.f32 %v406_v0, %v6272_v25  ;;  %v4911_v36 = vpack.c.bf16 %v651_v8, %v644_v1  ;;  %v776_v0 = vsub.f32 %v6250_v45, %v8306_v24  ;;  %v657_v49 = vsub.f32 %v6265_v6, %v8311_v10 }
  0x8a   : > { %v542_v53 = vsub.f32 %v6270_v41, %v541_v14  ;;  %v770_v11 = vand.u32 4294901760, %v769_v5  ;;  %v4919_v1 = vpack.c.bf16 %v6016_v22, %v6010_v16  ;;  %v664_v24 = vsub.f32 %v6275_v42, %v663_v35 }
  0x8b   : > { %v8308_v3 = vand.u32 4294901760, %v6285_v59  ;;  %4912 = vmatpush3.bf16.msra.mxu1 %v4911_v36  ;;  %v777_v8 = vand.u32 4294901760, %v776_v0  ;;  %v4923_v10 = vpack.c.bf16 %v6047_v44, %v6045_v43  ;;  %v4925_v0 = vpack.c.bf16 %v6072_v61, %v6070_v57 }
  0x8c   : > { %v543_v9 = vand.u32 4294901760, %v542_v53  ;;  %v665_v2 = vand.u32 4294901760, %v664_v24  ;;  %v8495_v24 = vand.u32 4294901760, %v6016_v22  ;;  %v4927_v22 = vpack.c.bf16 %v6091_v13, %v6089_v12 }
  0x8d   : > { %v548_v54 = vsub.f32 %v6285_v59, %v8308_v3  ;;  %v658_v3 = vand.u32 4294901760, %v657_v49  ;;  %v4913_v5 = vpack.c.bf16 %v777_v8, %v770_v11  ;;  %v8494_v11 = vand.u32 4294901760, %v6010_v16 }
  0x8e   : > { %544 = vmatprep.mubr.f32.mxu0 %v543_v9  ;;  %v8492_v9 = vand.u32 4294901760, %v6032_v32  ;;  %v8498_v8 = vand.u32 4294901760, %v6045_v43 }
  0x8f   : > { %v549_v53 = vand.u32 4294901760, %v548_v54  ;;  %4914 = vmatprep.subr.bf16.mxu1 %v4913_v5  ;;  %v4915_v36 = vpack.c.bf16 %v665_v2, %v658_v3  ;;  %v8493_v54 = vand.u32 4294901760, %v6034_v33  ;;  %v4983_v2 = vpack.c.bf16 %v8495_v24, %v8494_v11 }
  0x90   : > { %v8496_v3 = vand.u32 4294901760, %v6025_v27  ;;  %v8500_v33 = vand.u32 4294901760, %v6070_v57  ;;  %v8502_v27 = vand.u32 4294901760, %v6089_v12  ;;  %v8505_v57 = vand.u32 4294901760, %v6109_v58 }
  0x91   : > { %550 = vmatmul.mubr.f32.vlgmr.msra.gmra.mrb[0].mxu0 %v549_v53  ;;  %v4981_v49 = vpack.c.bf16 %v8493_v54, %v8492_v9  ;;  %4916 = vmatpush3.bf16.msra.mxu1 %v4915_v36  ;;  %v8501_v53 = vand.u32 4294901760, %v6072_v61  ;;  %v8506_v61 = vand.u32 4294901760, %v6119_v50  ;;  %v8507_v36 = vand.u32 4294901760, %v6125_v7 }
  0x92   : > { %4920 = vmatpush3.bf16.msra.mxu0 %v4919_v1  ;;  %917 = vmatprep.mubr.f32.mxu0 %v6270_v41  ;;  %v8499_v41 = vand.u32 4294901760, %v6047_v44  ;;  %v8504_v44 = vand.u32 4294901760, %v6105_v47  ;;  %v8508_v54 = vand.u32 4294901760, %v6139_v60  ;;  %v8509_v12 = vand.u32 4294901760, %v6143_v52 }
  0x93   : > { %4922 = vmatprep.subr.bf16.mxu0 %v4921_v40  ;;  %v8497_v40 = vand.u32 4294901760, %v6027_v28  ;;  %v6341_v16 = vpack.c.bf16 %v8501_v53, %v8500_v33  ;;  %4950 = vmatprep.subr.bf16.mxu1 %v6008_v15  ;;  %v8503_v28 = vand.u32 4294901760, %v6091_v13  ;;  %v6362_v9 = vpack.c.bf16 %v8507_v36, %v8506_v61 }
  0x94   : > { %v6335_v32 = vpack.c.bf16 %v8499_v41, %v8498_v8  ;;  %v6356_v5 = vpack.c.bf16 %v8505_v57, %v8504_v44  ;;  %v6368_v13 = vpack.c.bf16 %v8509_v12, %v8508_v54  ;;  %v8511_v11 = vand.u32 4294901760, %v6161_v56  ;;  %782 = vmatmul.mubr.f32.vlgmr.msra.gmra.mrb[0].mxu1 %v6272_v25  ;;  %v8524_v12 = vld [vmem:[#allocation16_spill] sm:$0xff] }
  0x95   : > { %v6329_v1 = vpack.c.bf16 %v8497_v40, %v8496_v3  ;;  %v6350_v43 = vpack.c.bf16 %v8503_v28, %v8502_v27  ;;  %v4929_v3 = vpack.c.bf16 %v6109_v58, %v6105_v47  ;;  %v8512_v40 = vand.u32 4294901760, %v6176_v55  ;;  %4952 = vmatpush3.bf16.msra.mxu1 %v6014_v21  ;;  %1024 = vmatprep.mubr.f32.mxu1 %v541_v14 }
  0x96   : > { %4924 = vmatpush3.bf16.msra.mxu0 %v4923_v10  ;;  %v8510_v10 = vand.u32 4294901760, %v6153_v20  ;;  %v8513_v8 = vand.u32 4294901760, %v6180_v37  ;;  %v8514_v33 = vand.u32 4294901760, %v6190_v19  ;;  %v8515_v53 = vand.u32 4294901760, %v6196_v31  ;;  %4954 = vmatprep.subr.bf16.mxu1 %v6018_v23 }
  0x97   : > { %4926 = vmatprep.subr.bf16.mxu0 %v4925_v0  ;;  %v8516_v0 = vand.u32 4294901760, %v6210_v4  ;;  %v8517_v28 = vand.u32 4294901760, %v6214_v34  ;;  %v8518_v58 = vand.u32 4294901760, %v6230_v30  ;;  %v8519_v44 = vand.u32 4294901760, %v6234_v48 }
  0x98   : > { %v6374_v24 = vpack.c.bf16 %v8511_v11, %v8510_v10  ;;  %v6383_v41 = vpack.c.bf16 %v8513_v8, %v8512_v40  ;;  %v6389_v27 = vpack.c.bf16 %v8515_v53, %v8514_v33  ;;  %v4931_v61 = vpack.c.bf16 %v6125_v7, %v6119_v50  ;;  %v324_v10 = vld [vmem:[%s5994_s26 + $0x190] sm:$0xff]  ;;  %v325_v11 = vld [vmem:[%s5994_s26 + $0x198] sm:$0xff] }
  0x99   : > { %v6396_v47 = vpack.c.bf16 %v8517_v28, %v8516_v0  ;;  %v6402_v57 = vpack.c.bf16 %v8519_v44, %v8518_v58  ;;  %v4933_v14 = vpack.c.bf16 %v6143_v52, %v6139_v60  ;;  %4956 = vmatpush3.bf16.msra.mxu1 %v6029_v29  ;;  %v4935_v36 = vpack.c.bf16 %v6161_v56, %v6153_v20  ;;  %v8520_v60 = vld [vmem:[#allocation12_spill] sm:$0xff]  ;;  %v8521_v20 = vld [vmem:[#allocation13_spill] sm:$0xff]  ;;  %v8522_v56 = vld [vmem:[#allocation14_spill] sm:$0xff] }
  0x9a   : > { %4928 = vmatpush3.bf16.msra.mxu0 %v4927_v22  ;;  %4958 = vmatprep.subr.bf16.mxu1 %v6040_v39  ;;  %v4937_v54 = vpack.c.bf16 %v6180_v37, %v6176_v55  ;;  %v4939_v50 = vpack.c.bf16 %v6196_v31, %v6190_v19  ;;  %v4941_v52 = vpack.c.bf16 %v6214_v34, %v6210_v4  ;;  %v322_v55 = vld [vmem:[%s5994_s26 + $0x180] sm:$0xff]  ;;  %v323_v19 = vld [vmem:[%s5994_s26 + $0x188] sm:$0xff]  ;;  %v1360_v53 = vand.u32 4294901760, %v324_v10  ;;  %v308_v0 = vld [vmem:[%s5994_s26 + $0x110] sm:$0xff] }
  0x9b   : > { %4930 = vmatprep.subr.bf16.mxu0 %v4929_v3  ;;  %v4943_v37 = vpack.c.bf16 %v6234_v48, %v6230_v30  ;;  %v4945_v7 = vpack.c.bf16 %v6250_v45, %v6236_v38  ;;  %v4947_v34 = vpack.c.bf16 %v6275_v42, %v6265_v6  ;;  %v8523_v31 = vld [vmem:[#allocation15_spill] sm:$0xff]  ;;  %v1354_v48 = vand.u32 4294901760, %v322_v55  ;;  %v8525_v40 = vld [vmem:[#allocation18_spill] sm:$0xff] }
  0x9c   : > { %v1357_v4 = vand.u32 4294901760, %v323_v19  ;;  %v306_v30 = vld [vmem:[%s5994_s26 + $0x100] sm:$0xff]  ;;  %v307_v22 = vld [vmem:[%s5994_s26 + $0x108] sm:$0xff]  ;;  %v309_v28 = vld [vmem:[%s5994_s26 + $0x118] sm:$0xff] }
  0x9d   : > { %4960 = vmatpush3.bf16.msra.mxu1 %v6050_v46  ;;  %v1309_v3 = vand.u32 4294901760, %v307_v22  ;;  %v6445_v8 = vsub.f32 %v322_v55, %v1354_v48  ;;  %v311_v55 = vld [vmem:[%s5994_s26 + $0x128] sm:$0xff] }
  0x9e   : > { %4932 = vmatpush3.bf16.msra.mxu0 %v4931_v61  ;;  %4962 = vmatprep.subr.bf16.mxu1 %v6074_v63  ;;  %v6447_v33 = vsub.f32 %v323_v19, %v1357_v4  ;;  %v326_v61 = vld [vmem:[%s5994_s26 + $0x1a0] sm:$0xff] }
  0x9f   : > { %4934 = vmatprep.subr.bf16.mxu0 %v4933_v14  ;;  %v6458_v44 = vsub.f32 %v307_v22, %v1309_v3  ;;  %v327_v14 = vld [vmem:[%s5994_s26 + $0x1a8] sm:$0xff] }
  0xa1   : > { %4964 = vmatpush3.bf16.msra.mxu1 %v6093_v17 }
  0xa2   : > { %4936 = vmatpush3.bf16.msra.mxu0 %v4935_v36  ;;  %4966 = vmatprep.subr.bf16.mxu1 %v6107_v51  ;;  %v1312_v36 = vand.u32 4294901760, %v308_v0 }
  0xa3   : > { %4938 = vmatprep.subr.bf16.mxu0 %v4937_v54  ;;  %v1315_v54 = vand.u32 4294901760, %v309_v28 }
  0xa5   : > { %4968 = vmatpush3.bf16.msra.mxu1 %v6127_v18  ;;  %v6511_v22 = vsub.f32 %v309_v28, %v1315_v54 }
  0xa6   : > { %4940 = vmatpush3.bf16.msra.mxu0 %v4939_v50  ;;  %4970 = vmatprep.subr.bf16.mxu1 %v8520_v60  ;;  %v8528_v50 = vand.u32 4294901760, %v6250_v45  ;;  %v8315_v45 = vand.u32 4294901760, %v6458_v44 }
  0xa7   : > { %4942 = vmatprep.subr.bf16.mxu0 %v4941_v52  ;;  %v1366_v52 = vand.u32 4294901760, %v326_v61 }
  0xa9   : > { %4972 = vmatpush3.bf16.msra.mxu1 %v8521_v20 }
  0xaa   : > { %4944 = vmatpush3.bf16.msra.mxu0 %v4943_v37  ;;  %4974 = vmatprep.subr.bf16.mxu1 %v8522_v56  ;;  %v1369_v37 = vand.u32 4294901760, %v327_v14 }
  0xab   : > { %4946 = vmatprep.subr.bf16.mxu0 %v4945_v7 }
  0xad   : > { %4976 = vmatpush3.bf16.msra.mxu1 %v8523_v31 }
  0xae   : > { %4948 = vmatpush3.bf16.msra.mxu0 %v4947_v34  ;;  %4978 = vmatprep.subr.bf16.mxu1 %v8524_v12  ;;  %v6485_v34 = vpack.c.bf16 %v1357_v4, %v1354_v48 }
  0xaf   : > { %4982 = vmatprep.subr.bf16.mxu0 %v4981_v49  ;;  %v1306_v49 = vand.u32 4294901760, %v306_v30 }
  0xb1   : > { %920 = vmatmul.mubr.f32.vlgmr.msra.gmra.mrb[2].mxu0 %v6285_v59  ;;  %4980 = vmatpush3.bf16.msra.mxu1 %v8525_v40  ;;  %v6456_v58 = vsub.f32 %v306_v30, %v1306_v49  ;;  %v6492_v19 = vpack.c.bf16 %v1309_v3, %v1306_v49  ;;  %v1321_v49 = vand.u32 4294901760, %v311_v55 }
  0xb2   : > { %4984 = vmatpush3.bf16.msra.mxu0 %v4983_v2  ;;  %1194 = vmatprep.mubr.f32.mxu0 %v6254_v62  ;;  %v1363_v2 = vand.u32 4294901760, %v325_v11 }
  0xb3   : > { %4986 = vmatprep.subr.bf16.mxu0 %v6329_v1  ;;  %5014 = vmatprep.subr.bf16.mxu1 %v6008_v15  ;;  %v8526_v1 = vand.u32 4294901760, %v6285_v59  ;;  %v8322_v15 = vand.u32 4294901760, %v6445_v8  ;;  %v6467_v59 = vsub.f32 %v324_v10, %v1360_v53  ;;  %v6513_v10 = vpack.c.bf16 %v1369_v37, %v1366_v52 }
  0xb4   : > { %v6494_v30 = vpack.c.bf16 %v1363_v2, %v1360_v53  ;;  %v329_v53 = vld [vmem:[%s5994_s26 + $0x1b8] sm:$0xff] }
  0xb5   : > { %1028 = vmatmul.mubr.f32.vlgmr.msra.gmra.mrb[2].mxu1 %v8526_v1  ;;  %v1533_v42 = vsub.f32 %v6445_v8, %v8322_v15  ;;  %v8313_v48 = vand.u32 4294901760, %v6467_v59  ;;  %8531 = vst [vmem:[#allocation13_spill] sm:$0xff] %v6513_v10 }
  0xb6   : > { %4988 = vmatpush3.bf16.msra.mxu0 %v6335_v32  ;;  %5016 = vmatpush3.bf16.msra.mxu1 %v6014_v21  ;;  %v8317_v32 = vand.u32 4294901760, %v6447_v33  ;;  %v8527_v21 = vand.u32 4294901760, %v6236_v38  ;;  %v8316_v38 = vand.u32 4294901760, %v6456_v58 }
  0xb7   : > { %4990 = vmatprep.subr.bf16.mxu0 %v6341_v16  ;;  %1298 = vmatprep.mubr.f32.mxu1 %v6254_v62  ;;  %v6469_v16 = vsub.f32 %v325_v11, %v1363_v2  ;;  %v8314_v2 = vsub.s32 3, %v6022_v26  ;;  %v1534_v28 = vand.u32 4294901760, %v1533_v42  ;;  %v6549_v42 = vsub.f32 %v311_v55, %v1321_v49  ;;  %v331_v55 = vld [vmem:[%s5994_s26 + $0x1c8] sm:$0xff] }
  0xb8   : > { %5018 = vmatprep.subr.bf16.mxu1 %v6018_v23  ;;  %v6476_v62 = vpack.c.bf16 %v8528_v50, %v8527_v21  ;;  %v8529_v23 = vand.u32 4294901760, %v6265_v6  ;;  %v1540_v6 = vsub.f32 %v6447_v33, %v8317_v32  ;;  %v1421_v3 = vsub.f32 %v6456_v58, %v8316_v38  ;;  %v313_v21 = vld [vmem:[%s5994_s26 + $0x138] sm:$0xff] }
  0xb9   : > { %v8312_v4 = vand.u32 4294901760, %v6469_v16 }
  0xba   : > { %4992 = vmatpush3.bf16.msra.mxu0 %v6350_v43  ;;  %v6483_v7 = vpack.c.bf16 %v663_v35, %v8529_v23  ;;  %v310_v43 = vld [vmem:[%s5994_s26 + $0x120] sm:$0xff]  ;;  %5020 = vmatpush3.bf16.msra.mxu1 %v6029_v29  ;;  %v6503_v35 = vpack.c.bf16 %v1315_v54, %v1312_v36  ;;  %v328_v29 = vld [vmem:[%s5994_s26 + $0x1b0] sm:$0xff]  ;;  %v1541_v1 = vand.u32 4294901760, %v1540_v6  ;;  %v8318_v23 = vand.u32 4294901760, %v6511_v22 }
  0xbb   : > { %4994 = vmatprep.subr.bf16.mxu0 %v6356_v5  ;;  %5022 = vmatprep.subr.bf16.mxu1 %v6040_v39  ;;  %v6505_v5 = vsub.f32 %v308_v0, %v1312_v36  ;;  %v1318_v11 = vand.u32 4294901760, %v310_v43  ;;  %v6516_v39 = vsub.f32 %v326_v61, %v1366_v52  ;;  %v6527_v0 = vsub.f32 %v327_v14, %v1369_v37  ;;  %v312_v54 = vld [vmem:[%s5994_s26 + $0x130] sm:$0xff] }
  0xbc   : > { %8530 = vst [vmem:[#allocation12_spill] sm:$0xff] %v6503_v35  ;;  %v1547_v61 = vsub.f32 %v6467_v59, %v8313_v48  ;;  %v1554_v36 = vsub.f32 %v6469_v16, %v8312_v4  ;;  %v1375_v37 = vand.u32 4294901760, %v329_v53  ;;  %v1422_v6 = vand.u32 4294901760, %v1421_v3 }
  0xbd   : > { %v8321_v50 = vand.u32 4294901760, %v6505_v5  ;;  %v6545_v52 = vsub.f32 %v310_v43, %v1318_v11  ;;  %v1324_v43 = vand.u32 4294901760, %v312_v54  ;;  %v8319_v3 = vand.u32 4294901760, %v6527_v0 }
  0xbe   : > { %4996 = vmatpush3.bf16.msra.mxu0 %v6362_v9  ;;  %v1428_v9 = vsub.f32 %v6458_v44, %v8315_v45  ;;  %5024 = vmatpush3.bf16.msra.mxu1 %v6050_v46  ;;  %v8532_v46 = vld [vmem:[#allocation17_spill] sm:$0xff]  ;;  %v330_v45 = vld [vmem:[%s5994_s26 + $0x1c0] sm:$0xff]  ;;  %v1548_v38 = vand.u32 4294901760, %v1547_v61  ;;  %v1555_v32 = vand.u32 4294901760, %v1554_v36 }
  0xbf   : > { %4998 = vmatprep.subr.bf16.mxu0 %v6368_v13  ;;  %v1372_v13 = vand.u32 4294901760, %v328_v29  ;;  %5026 = vmatprep.subr.bf16.mxu1 %v6074_v63  ;;  %v418_v14 = vrot.slane %v8532_v46, %v8314_v2  ;;  %v6543_v63 = vpack.c.bf16 %v1321_v49, %v1318_v11  ;;  %v6554_v2 = vpack.c.bf16 %v1541_v1, %v1534_v28 }
  0xc0   : > { %v1429_v4 = vand.u32 4294901760, %v1428_v9  ;;  %v1327_v11 = vand.u32 4294901760, %v313_v21  ;;  %v6578_v28 = vsub.f32 %v329_v53, %v1375_v37  ;;  %v1378_v1 = vand.u32 4294901760, %v330_v45 }
  0xc1   : > { %8533 = vst [vmem:[#allocation14_spill] sm:$0xff] %v6543_v63  ;;  %v6551_v48 = vand.u32 4294901760, %v418_v14  ;;  %v6584_v61 = vsub.f32 %v312_v54, %v1324_v43 }
  0xc2   : > { %5000 = vmatpush3.bf16.msra.mxu0 %v6374_v24  ;;  %5028 = vmatpush3.bf16.msra.mxu1 %v6093_v17  ;;  %v6556_v24 = vsub.f32 %v328_v29, %v1372_v13  ;;  %v6568_v17 = vpack.c.bf16 %v1375_v37, %v1372_v13  ;;  %v8320_v29 = vand.u32 4294901760, %v6516_v39  ;;  %v6576_v9 = vpack.c.bf16 %v1429_v4, %v1422_v6 }
  0xc3   : > { %5002 = vmatprep.subr.bf16.mxu0 %v6383_v41  ;;  %8534 = vst [vmem:[#allocation15_spill] sm:$0xff] %v6551_v48  ;;  %5030 = vmatprep.subr.bf16.mxu1 %v6107_v51  ;;  %v1435_v41 = vsub.f32 %v6505_v5, %v8321_v50  ;;  %v6565_v49 = vsub.f32 %v418_v14, %v6551_v48  ;;  %v1381_v14 = vand.u32 4294901760, %v331_v55  ;;  %v8325_v37 = vand.u32 4294901760, %v6545_v52 }
  0xc4   : > { %8535 = vst [vmem:[#allocation16_spill] sm:$0xff] %v6556_v24  ;;  %8536 = vst [vmem:[#allocation18_spill] sm:$0xff] %v6568_v17  ;;  %v1442_v51 = vsub.f32 %v6511_v22, %v8318_v23  ;;  %v6582_v13 = vpack.c.bf16 %v1327_v11, %v1324_v43  ;;  %v6586_v36 = vsub.f32 %v313_v21, %v1327_v11  ;;  %v314_v23 = vld [vmem:[%s5994_s26 + $0x140] sm:$0xff]  ;;  %v332_v43 = vld [vmem:[%s5994_s26 + $0x1d0] sm:$0xff] }
  0xc5   : > { %v6591_v4 = vpack.c.bf16 %v1555_v32, %v1548_v38  ;;  %v1436_v53 = vand.u32 4294901760, %v1435_v41  ;;  %v1561_v54 = vsub.f32 %v6516_v39, %v8320_v29  ;;  %v1568_v21 = vsub.f32 %v6527_v0, %v8319_v3  ;;  %v333_v11 = vld [vmem:[%s5994_s26 + $0x1d8] sm:$0xff]  ;;  %v6628_v29 = vld [vmem:[%s5994_s26 + $0x150] sm:$0xff] }
  0xc6   : > { %5004 = vmatpush3.bf16.msra.mxu0 %v6389_v27  ;;  %v8323_v27 = vand.u32 4294901760, %v6565_v49  ;;  %5032 = vmatpush3.bf16.msra.mxu1 %v6127_v18  ;;  %8537 = vst [vmem:[#allocation17_spill] sm:$0xff] %v6586_v36  ;;  %v8324_v18 = vand.u32 4294901760, %v6549_v42  ;;  %v1443_v6 = vand.u32 4294901760, %v1442_v51  ;;  %v1330_v32 = vand.u32 4294901760, %v314_v23 }
  0xc7   : > { %5006 = vmatprep.subr.bf16.mxu0 %v6396_v47  ;;  %v315_v47 = vld [vmem:[%s5994_s26 + $0x148] sm:$0xff]  ;;  %5034 = vmatprep.subr.bf16.mxu1 %v8520_v60  ;;  %v8329_v41 = vand.u32 4294901760, %v6578_v28  ;;  %v6611_v51 = vpack.c.bf16 %v1381_v14, %v1378_v1  ;;  %v6613_v3 = vsub.f32 %v330_v45, %v1378_v1  ;;  %v1449_v15 = vsub.f32 %v6545_v52, %v8325_v37 }
  0xc8   : > { %v1404_v60 = vsub.f32 %v6565_v49, %v8323_v27  ;;  %v1333_v38 = vand.u32 4294901760, %v315_v47  ;;  %v1384_v27 = vand.u32 4294901760, %v332_v43  ;;  %v1562_v45 = vand.u32 4294901760, %v1561_v54 }
  0xc9   : > { %8538 = vst [vmem:[#allocation19_spill] sm:$0xff] %v6611_v51  ;;  %8539 = vst [vmem:[#allocation20_spill] sm:$0xff] %v6613_v3  ;;  %v1569_v1 = vand.u32 4294901760, %v1568_v21  ;;  %v1387_v50 = vand.u32 4294901760, %v333_v11  ;;  %v6642_v54 = vsub.f32 %v314_v23, %v1330_v32  ;;  %v8544_v37 = vand.u32 4294901760, %v6586_v36 }
  0xca   : > { %5008 = vmatpush3.bf16.msra.mxu0 %v6402_v57  ;;  %v8326_v57 = vand.u32 4294901760, %v6556_v24  ;;  %5036 = vmatpush3.bf16.msra.mxu1 %v8521_v20  ;;  %v1456_v20 = vsub.f32 %v6549_v42, %v8324_v18  ;;  %v6644_v21 = vsub.f32 %v315_v47, %v1333_v38  ;;  %v8332_v47 = vand.u32 4294901760, %v6628_v29 }
  0xcb   : > { %5010 = vmatprep.subr.bf16.mxu0 %v6476_v62  ;;  %5038 = vmatprep.subr.bf16.mxu1 %v8522_v56  ;;  %v6618_v62 = vsub.f32 %v331_v55, %v1381_v14  ;;  %v1405_v56 = vand.u32 4294901760, %v1404_v60  ;;  %v6631_v55 = vpack.c.bf16 %v1443_v6, %v1436_v53  ;;  %v6633_v14 = vpack.c.bf16 %v1333_v38, %v1330_v32  ;;  %v6647_v60 = vld [vmem:[%s5994_s26 + $0x158] sm:$0xff]  ;;  %v6662_v32 = vld [vmem:[%s5994_s26 + $0x1e8] sm:$0xff]  ;;  %v6688_v38 = vld [vmem:[%s5994_s26 + $0x160] sm:$0xff] }
  0xcc   : > { %v1575_v18 = vsub.f32 %v6556_v24, %v8326_v57  ;;  %8541 = vst [vmem:[#allocation22_spill] sm:$0xff] %v6642_v54  ;;  %8542 = vst [vmem:[#allocation23_spill] sm:$0xff] %v6644_v21  ;;  %v8543_v53 = vand.u32 4294901760, %v6584_v61  ;;  %v1470_v57 = vsub.f32 %v6586_v36, %v8544_v37  ;;  %v6656_v24 = vld [vmem:[%s5994_s26 + $0x1e0] sm:$0xff]  ;;  %v1457_v23 = vand.u32 4294901760, %v1456_v20 }
  0xcd   : > { %8540 = vst [vmem:[#allocation21_spill] sm:$0xff] %v6618_v62  ;;  %v6668_v37 = vsub.f32 %v333_v11, %v1387_v50  ;;  %v8333_v36 = vand.u32 4294901760, %v6618_v62  ;;  %v8334_v20 = vand.u32 4294901760, %v6647_v60 }
  0xce   : > { %5012 = vmatpush3.bf16.msra.mxu0 %v6483_v7  ;;  %v1582_v7 = vsub.f32 %v6578_v28, %v8329_v41  ;;  %5040 = vmatpush3.bf16.msra.mxu1 %v8523_v31  ;;  %v1463_v6 = vsub.f32 %v6584_v61, %v8543_v53  ;;  %v1450_v31 = vand.u32 4294901760, %v1449_v15  ;;  %v5085_v53 = vpack.c.bf16 %v1569_v1, %v1562_v45 }
  0xcf   : > { %5046 = vmatprep.subr.bf16.mxu0 %v6485_v34  ;;  %5042 = vmatprep.subr.bf16.mxu1 %v8524_v12  ;;  %v6666_v41 = vsub.f32 %v332_v43, %v1384_v27  ;;  %8546 = vst [vmem:[#allocation25_spill] sm:$0xff] %v6668_v37  ;;  %v1576_v12 = vand.u32 4294901760, %v1575_v18  ;;  %v6675_v43 = vpack.c.bf16 %v1387_v50, %v1384_v27  ;;  %v1471_v45 = vand.u32 4294901760, %v1470_v57  ;;  %v6691_v50 = vld [vmem:[%s5994_s26 + $0x168] sm:$0xff] }
  0xd0   : > { %v1583_v15 = vand.u32 4294901760, %v1582_v7  ;;  %v1464_v11 = vand.u32 4294901760, %v1463_v6  ;;  %v8335_v1 = vand.u32 4294901760, %v6662_v32  ;;  %v6682_v18 = vsub.f32 %v6628_v29, %v8332_v47 }
  0xd1   : > { %1196 = vmatmul.mubr.f32.vlgmr.msra.gmra.mrb[4].mxu0 %v6272_v25  ;;  %8545 = vst [vmem:[#allocation24_spill] sm:$0xff] %v6666_v41  ;;  %v8547_v7 = vand.u32 4294901760, %v6613_v3  ;;  %v8548_v6 = vand.u32 4294901760, %v6656_v24  ;;  %v8552_v27 = vand.u32 4294901760, %v6666_v41 }
  0xd2   : > { %5048 = vmatpush3.bf16.msra.mxu0 %v6492_v19  ;;  %1406 = vmatprep.mubr.f32.mxu0 %v1405_v56  ;;  %v5087_v56 = vpack.c.bf16 %v1457_v23, %v1450_v31  ;;  %v6701_v31 = vld [vmem:[%s5994_s26 + $0x1f0] sm:$0xff]  ;;  %v6704_v23 = vld [vmem:[%s5994_s26 + $0x1f8] sm:$0xff]  ;;  %v5089_v47 = vpack.c.bf16 %v1583_v15, %v1576_v12  ;;  %v8550_v12 = vand.u32 4294901760, %v6642_v54 }
  0xd3   : > { %5050 = vmatprep.subr.bf16.mxu0 %v6494_v30  ;;  %5044 = vmatpush3.bf16.msra.mxu1 %v8525_v40  ;;  %v1589_v40 = vsub.f32 %v6613_v3, %v8547_v7  ;;  %v6717_v57 = vsub.f32 %v6656_v24, %v8548_v6  ;;  %v6724_v7 = vsub.f32 %v6662_v32, %v8335_v1 }
  0xd4   : > { %5078 = vmatprep.subr.bf16.mxu1 %v6554_v2  ;;  %v1596_v2 = vsub.f32 %v6618_v62, %v8333_v36  ;;  %v6712_v36 = vsub.f32 %v6647_v60, %v8334_v20 }
  0xd5   : > { %v1590_v6 = vand.u32 4294901760, %v1589_v40  ;;  %v8551_v40 = vand.u32 4294901760, %v6644_v21  ;;  %v8560_v3 = vand.u32 4294901760, %v6717_v57 }
  0xd6   : > { %5052 = vmatpush3.bf16.msra.mxu0 %v6503_v35  ;;  %1300 = vmatmul.mubr.f32.vlgmr.msra.gmra.mrb[4].mxu1 %v6272_v25  ;;  %v5091_v25 = vpack.c.bf16 %v1471_v45, %v1464_v11  ;;  %v6736_v11 = vld [vmem:[%s5994_s26 + $0x178] sm:$0xff]  ;;  %v8549_v45 = vsub.s32 2, %v6022_v26  ;;  %v1597_v15 = vand.u32 4294901760, %v1596_v2  ;;  %v8553_v26 = vand.u32 4294901760, %v6668_v37 }
  0xd7   : > { %5054 = vmatprep.subr.bf16.mxu0 %v6513_v10  ;;  %5080 = vmatpush3.bf16.msra.mxu1 %v6576_v9  ;;  %v6733_v9 = vld [vmem:[%s5994_s26 + $0x170] sm:$0xff]  ;;  %v1484_v20 = vsub.f32 %v6644_v21, %v8551_v40  ;;  %v8554_v40 = vand.u32 4294901760, %v6688_v38  ;;  %v1351_v2 = vand.u32 4294901760, %v6736_v11 }
  0xd8   : > { %1642 = vmatprep.mubr.f32.mxu1 %v6551_v48  ;;  %5082 = vmatprep.subr.bf16.mxu1 %v6591_v4  ;;  %v414_v1 = vrot.slane %v8532_v46, %v8549_v45  ;;  %v1477_v4 = vsub.f32 %v6642_v54, %v8550_v12  ;;  %v1603_v48 = vsub.f32 %v6666_v41, %v8552_v27  ;;  %v8555_v27 = vand.u32 4294901760, %v6691_v50 }
  0xd9   : > { %v1610_v46 = vsub.f32 %v6668_v37, %v8553_v26  ;;  %v1348_v26 = vand.u32 4294901760, %v6733_v9  ;;  %v8556_v45 = vand.u32 4294901760, %v6701_v31  ;;  %v5093_v41 = vpack.c.bf16 %v1597_v15, %v1590_v6 }
  0xda   : > { %5056 = vmatpush3.bf16.msra.mxu0 %v6543_v63  ;;  %v6762_v63 = vsub.f32 %v6688_v38, %v8554_v40  ;;  %v6781_v37 = vand.u32 4294901760, %v414_v1  ;;  %v1478_v21 = vand.u32 4294901760, %v1477_v4  ;;  %v1485_v54 = vand.u32 4294901760, %v1484_v20 }
  0xdb   : > { %5058 = vmatprep.subr.bf16.mxu0 %v6568_v17  ;;  %5084 = vmatpush3.bf16.msra.mxu1 %v6631_v55  ;;  %v6767_v17 = vsub.f32 %v6691_v50, %v8555_v27  ;;  %v6774_v12 = vsub.f32 %v6701_v31, %v8556_v45  ;;  %v8557_v55 = vand.u32 4294901760, %v6704_v23  ;;  %v1611_v10 = vand.u32 4294901760, %v1610_v46 }
  0xdc   : > { %5086 = vmatprep.subr.bf16.mxu1 %v5085_v53  ;;  %v1604_v53 = vand.u32 4294901760, %v1603_v48  ;;  %v8558_v45 = vand.u32 4294901760, %v6682_v18  ;;  %v1617_v27 = vsub.f32 %v6717_v57, %v8560_v3  ;;  %v6796_v15 = vsub.f32 %v6733_v9, %v1348_v26 }
  0xdd   : > { %v6779_v40 = vsub.f32 %v6704_v23, %v8557_v55  ;;  %v8559_v55 = vand.u32 4294901760, %v6712_v36  ;;  %v6799_v48 = vsub.f32 %v6736_v11, %v1351_v2  ;;  %v6804_v4 = vsub.f32 %v414_v1, %v6781_v37 }
  0xde   : > { %5060 = vmatpush3.bf16.msra.mxu0 %v6582_v13  ;;  %v1491_v35 = vsub.f32 %v6682_v18, %v8558_v45  ;;  %v8561_v46 = vand.u32 4294901760, %v6724_v7  ;;  %v8562_v9 = vand.u32 4294901760, %v6628_v29  ;;  %v8563_v11 = vand.u32 4294901760, %v6647_v60 }
  0xdf   : > { %5062 = vmatprep.subr.bf16.mxu0 %v6611_v51  ;;  %v1498_v62 = vsub.f32 %v6712_v36, %v8559_v55  ;;  %5088 = vmatpush3.bf16.msra.mxu1 %v5087_v56  ;;  %v8565_v1 = vand.u32 4294901760, %v6662_v32  ;;  %v5095_v20 = vpack.c.bf16 %v1485_v54, %v1478_v21  ;;  %v1618_v51 = vand.u32 4294901760, %v1617_v27 }
  0xe0   : > { %5090 = vmatprep.subr.bf16.mxu1 %v5089_v47  ;;  %v1624_v45 = vsub.f32 %v6724_v7, %v8561_v46  ;;  %v6816_v55 = vpack.c.bf16 %v8563_v11, %v8562_v9  ;;  %v8564_v47 = vand.u32 4294901760, %v6656_v24  ;;  %v5097_v46 = vpack.c.bf16 %v1611_v10, %v1604_v53 }
  0xe1   : > { %v1492_v3 = vand.u32 4294901760, %v1491_v35  ;;  %v1499_v56 = vand.u32 4294901760, %v1498_v62  ;;  %v8566_v29 = vand.u32 4294901760, %v6762_v63  ;;  %v8567_v9 = vand.u32 4294901760, %v6767_v17 }
  0xe2   : > { %5064 = vmatpush3.bf16.msra.mxu0 %v6633_v14  ;;  %v6822_v6 = vpack.c.bf16 %v8565_v1, %v8564_v47  ;;  %v8363_v32 = vand.u32 4294901760, %v6796_v15  ;;  %v8362_v11 = vand.u32 4294901760, %v6799_v48  ;;  %v8364_v54 = vand.u32 4294901760, %v6804_v4 }
  0xe3   : > { %5066 = vmatprep.subr.bf16.mxu0 %v6675_v43  ;;  %5092 = vmatpush3.bf16.msra.mxu1 %v5091_v25  ;;  %v1505_v60 = vsub.f32 %v6762_v63, %v8566_v29  ;;  %v1512_v24 = vsub.f32 %v6767_v17, %v8567_v9  ;;  %v1625_v10 = vand.u32 4294901760, %v1624_v45  ;;  %v8568_v35 = vand.u32 4294901760, %v6774_v12 }
  0xe4   : > { %5094 = vmatprep.subr.bf16.mxu1 %v5093_v41  ;;  %v8569_v21 = vand.u32 4294901760, %v6779_v40  ;;  %v8570_v27 = vand.u32 4294901760, %v6688_v38  ;;  %v8571_v53 = vand.u32 4294901760, %v6691_v50  ;;  %v8572_v41 = vand.u32 4294901760, %v6701_v31 }
  0xe5   : > { %v1631_v62 = vsub.f32 %v6774_v12, %v8568_v35  ;;  %v8573_v45 = vand.u32 4294901760, %v6704_v23  ;;  %v5099_v29 = vpack.c.bf16 %v1499_v56, %v1492_v3  ;;  %v1506_v9 = vand.u32 4294901760, %v1505_v60 }
  0xe6   : > { %v1638_v25 = vsub.f32 %v6779_v40, %v8569_v21  ;;  %5068 = vmatpush3.bf16.msra.mxu0 %v6816_v55  ;;  %v6845_v47 = vpack.c.bf16 %v8571_v53, %v8570_v27  ;;  %v1513_v35 = vand.u32 4294901760, %v1512_v24  ;;  %v1519_v38 = vsub.f32 %v6796_v15, %v8363_v32 }
  0xe7   : > { %5070 = vmatprep.subr.bf16.mxu0 %v6822_v6  ;;  %v6852_v1 = vpack.c.bf16 %v8573_v45, %v8572_v41  ;;  %5096 = vmatpush3.bf16.msra.mxu1 %v5095_v20  ;;  %v1526_v50 = vsub.f32 %v6799_v48, %v8362_v11  ;;  %v1410_v31 = vsub.f32 %v6804_v4, %v8364_v54  ;;  %v1632_v21 = vand.u32 4294901760, %v1631_v62  ;;  %v8574_v41 = vld [vmem:[#allocation16_spill] sm:$0xff]  ;;  %v357_v54 = vld [vmem:[%s5994_s26 + $0x298] sm:$0xff] }
  0xe8   : > { %5098 = vmatprep.subr.bf16.mxu1 %v5097_v46  ;;  %v5101_v23 = vpack.c.bf16 %v1625_v10, %v1618_v51  ;;  %v1639_v27 = vand.u32 4294901760, %v1638_v25  ;;  %v6864_v20 = vpack.c.bf16 %v1351_v2, %v1348_v26  ;;  %v5109_v3 = vpack.c.bf16 %v6447_v33, %v6445_v8 }
  0xe9   : > { %v5103_v56 = vpack.c.bf16 %v1513_v35, %v1506_v9  ;;  %v1520_v60 = vand.u32 4294901760, %v1519_v38  ;;  %v1527_v46 = vand.u32 4294901760, %v1526_v50  ;;  %v1411_v24 = vand.u32 4294901760, %v1410_v31  ;;  %v8576_v9 = vld [vmem:[#allocation17_spill] sm:$0xff]  ;;  %v8577_v38 = vld [vmem:[#allocation20_spill] sm:$0xff] }
  0xea   : > { %5072 = vmatpush3.bf16.msra.mxu0 %v6845_v47  ;;  %v5105_v53 = vpack.c.bf16 %v1639_v27, %v1632_v21  ;;  %v5111_v51 = vpack.c.bf16 %v6458_v44, %v6456_v58  ;;  %v5113_v2 = vpack.c.bf16 %v6469_v16, %v6467_v59  ;;  %v5115_v10 = vpack.c.bf16 %v6511_v22, %v6505_v5  ;;  %v8578_v50 = vld [vmem:[#allocation21_spill] sm:$0xff]  ;;  %v8581_v27 = vld [vmem:[#allocation22_spill] sm:$0xff] }
  0xeb   : > { %5074 = vmatprep.subr.bf16.mxu0 %v6852_v1  ;;  %5100 = vmatpush3.bf16.msra.mxu1 %v5099_v29  ;;  %v5107_v26 = vpack.c.bf16 %v1527_v46, %v1520_v60  ;;  %v5117_v62 = vpack.c.bf16 %v6527_v0, %v6516_v39  ;;  %v5119_v25 = vpack.c.bf16 %v6549_v42, %v6545_v52  ;;  %v8575_v29 = vand.u32 4294901760, %v6565_v49  ;;  %v8580_v21 = vld [vmem:[#allocation13_spill] sm:$0xff] }
  0xec   : > { %5102 = vmatprep.subr.bf16.mxu1 %v5101_v23  ;;  %v5121_v45 = vpack.c.bf16 %v6578_v28, %v8574_v41  ;;  %v5123_v35 = vpack.c.bf16 %v8576_v9, %v6584_v61  ;;  %v5125_v31 = vpack.c.bf16 %v8578_v50, %v8577_v38  ;;  %v8579_v23 = vld [vmem:[#allocation12_spill] sm:$0xff]  ;;  %v8584_v60 = vld [vmem:[#allocation25_spill] sm:$0xff]  ;;  %v8605_v11 = vand.u32 4294901760, %v8577_v38 }
  0xed   : > { %v8606_v32 = vand.u32 4294901760, %v8578_v50  ;;  %v8608_v50 = vand.u32 4294901760, %v6804_v4 }
  0xee   : > { %5076 = vmatpush3.bf16.msra.mxu0 %v6864_v20 }
  0xef   : > { %5110 = vmatprep.subr.bf16.mxu0 %v5109_v3  ;;  %5104 = vmatpush3.bf16.msra.mxu1 %v5103_v56  ;;  %v8582_v3 = vld [vmem:[#allocation23_spill] sm:$0xff] }
  0xf0   : > { %5106 = vmatprep.subr.bf16.mxu1 %v5105_v53  ;;  %v5127_v56 = vpack.c.bf16 %v8582_v3, %v8581_v27  ;;  %v8586_v53 = vld [vmem:[#allocation18_spill] sm:$0xff] }
  0xf1   : > { %1412 = vmatmul.mubr.f32.vlgmr.msra.gmra.mrb[6].mxu0 %v1411_v24  ;;  %v8585_v24 = vld [vmem:[#allocation14_spill] sm:$0xff] }
  0xf2   : > { %5112 = vmatpush3.bf16.msra.mxu0 %v5111_v51  ;;  %1779 = vmatprep.mubr.f32.mxu0 %v6565_v49  ;;  %v8583_v49 = vld [vmem:[#allocation24_spill] sm:$0xff]  ;;  %v5131_v51 = vpack.c.bf16 %v6712_v36, %v6682_v18 }
  0xf3   : > { %5114 = vmatprep.subr.bf16.mxu0 %v5113_v2  ;;  %5108 = vmatpush3.bf16.msra.mxu1 %v5107_v26  ;;  %v5129_v46 = vpack.c.bf16 %v8584_v60, %v8583_v49  ;;  %v5133_v2 = vpack.c.bf16 %v6724_v7, %v6717_v57  ;;  %v8587_v26 = vld [vmem:[#allocation19_spill] sm:$0xff] }
  0xf4   : > { %5142 = vmatprep.subr.bf16.mxu1 %v6485_v34 }
  0xf6   : > { %5116 = vmatpush3.bf16.msra.mxu0 %v5115_v10  ;;  %1644 = vmatmul.mubr.f32.vlgmr.msra.gmra.mrb[6].mxu1 %v6781_v37  ;;  %v5135_v10 = vpack.c.bf16 %v6767_v17, %v6762_v63 }
  0xf7   : > { %5118 = vmatprep.subr.bf16.mxu0 %v5117_v62  ;;  %5144 = vmatpush3.bf16.msra.mxu1 %v6492_v19  ;;  %v5137_v62 = vpack.c.bf16 %v6779_v40, %v6774_v12 }
  0xf8   : > { %1886 = vmatprep.mubr.f32.mxu1 %v8575_v29  ;;  %5146 = vmatprep.subr.bf16.mxu1 %v6494_v30  ;;  %v8589_v29 = vand.u32 4294901760, %v6447_v33  ;;  %v6933_v33 = vld [vmem:[%s5994_s26 + $0x288] sm:$0xff] }
  0xfa   : > { %5120 = vmatpush3.bf16.msra.mxu0 %v5119_v25  ;;  %v5139_v25 = vpack.c.bf16 %v6799_v48, %v6796_v15 }
  0xfb   : > { %5122 = vmatprep.subr.bf16.mxu0 %v5121_v45  ;;  %5148 = vmatpush3.bf16.msra.mxu1 %v8579_v23  ;;  %v8588_v45 = vand.u32 4294901760, %v6445_v8  ;;  %v6930_v8 = vld [vmem:[%s5994_s26 + $0x280] sm:$0xff] }
  0xfc   : > { %5150 = vmatprep.subr.bf16.mxu1 %v8580_v21 }
  0xfe   : > { %5124 = vmatpush3.bf16.msra.mxu0 %v5123_v35  ;;  %v5173_v35 = vpack.c.bf16 %v8589_v29, %v8588_v45  ;;  %v2216_v45 = vand.u32 4294901760, %v6930_v8  ;;  %v2219_v29 = vand.u32 4294901760, %v6933_v33 }
  0xff   : > { %5126 = vmatprep.subr.bf16.mxu0 %v5125_v31  ;;  %5152 = vmatpush3.bf16.msra.mxu1 %v8585_v24  ;;  %v8590_v31 = vand.u32 4294901760, %v6456_v58  ;;  %v8594_v58 = vand.u32 4294901760, %v6505_v5 }
 0x100   : > { %5154 = vmatprep.subr.bf16.mxu1 %v8586_v53 }
 0x102   : > { %5128 = vmatpush3.bf16.msra.mxu0 %v5127_v56  ;;  %v8591_v56 = vand.u32 4294901760, %v6458_v44  ;;  %v8595_v44 = vand.u32 4294901760, %v6511_v22  ;;  %v356_v22 = vld [vmem:[%s5994_s26 + $0x290] sm:$0xff] }
 0x103   : > { %5130 = vmatprep.subr.bf16.mxu0 %v5129_v46  ;;  %5156 = vmatpush3.bf16.msra.mxu1 %v6582_v13 }
 0x104   : > { %5158 = vmatprep.subr.bf16.mxu1 %v8587_v26  ;;  %v5175_v46 = vpack.c.bf16 %v8591_v56, %v8590_v31  ;;  %v8597_v31 = vand.u32 4294901760, %v6516_v39  ;;  %v8598_v56 = vand.u32 4294901760, %v6527_v0  ;;  %v8603_v0 = vand.u32 4294901760, %v6584_v61  ;;  %v340_v61 = vld [vmem:[%s5994_s26 + $0x210] sm:$0xff] }
 0x106   : > { %5132 = vmatpush3.bf16.msra.mxu0 %v5131_v51  ;;  %v8592_v51 = vand.u32 4294901760, %v6467_v59  ;;  %v5179_v59 = vpack.c.bf16 %v8595_v44, %v8594_v58  ;;  %v5181_v5 = vpack.c.bf16 %v8598_v56, %v8597_v31  ;;  %v8601_v44 = vand.u32 4294901760, %v8574_v41  ;;  %v341_v41 = vld [vmem:[%s5994_s26 + $0x218] sm:$0xff] }
 0x107   : > { %5134 = vmatprep.subr.bf16.mxu0 %v5133_v2  ;;  %5160 = vmatpush3.bf16.msra.mxu1 %v6633_v14  ;;  %v8593_v2 = vand.u32 4294901760, %v6469_v16  ;;  %v8596_v16 = vld [vmem:[#allocation15_spill] sm:$0xff]  ;;  %v8604_v31 = vand.u32 4294901760, %v8576_v9 }
 0x108   : > { %5162 = vmatprep.subr.bf16.mxu1 %v6675_v43  ;;  %v8607_v9 = vld [vmem:[#allocation11_spill] sm:$0xff] }
 0x109   : > { %v5187_v56 = vpack.c.bf16 %v8604_v31, %v8603_v0  ;;  %v8365_v38 = vsub.s32 5, %v8607_v9 }
 0x10a   : > { %5136 = vmatpush3.bf16.msra.mxu0 %v5135_v10  ;;  %v5177_v10 = vpack.c.bf16 %v8593_v2, %v8592_v51  ;;  %v8599_v51 = vand.u32 4294901760, %v6545_v52  ;;  %v8600_v2 = vand.u32 4294901760, %v6549_v42  ;;  %v6975_v52 = vsub.f32 %v6930_v8, %v2216_v45 }
 0x10b   : > { %5138 = vmatprep.subr.bf16.mxu0 %v5137_v62  ;;  %5164 = vmatpush3.bf16.msra.mxu1 %v6816_v55  ;;  %v6936_v62 = vld [vmem:[%s5994_s26 + $0x200] sm:$0xff]  ;;  %v6978_v42 = vsub.f32 %v6933_v33, %v2219_v29  ;;  %v8611_v33 = vand.u32 4294901760, %v8583_v49  ;;  %v8616_v49 = vand.u32 4294901760, %v6724_v7  ;;  %v8620_v7 = vand.u32 4294901760, %v6779_v40 }
 0x10c   : > { %5166 = vmatprep.subr.bf16.mxu1 %v6822_v6  ;;  %v5183_v58 = vpack.c.bf16 %v8600_v2, %v8599_v51  ;;  %v2222_v2 = vand.u32 4294901760, %v356_v22 }
 0x10e   : > { %5140 = vmatpush3.bf16.msra.mxu0 %v5139_v25  ;;  %v339_v25 = vld [vmem:[%s5994_s26 + $0x208] sm:$0xff] }
 0x10f   : > { %5174 = vmatprep.subr.bf16.mxu0 %v5173_v35  ;;  %5168 = vmatpush3.bf16.msra.mxu1 %v6845_v47  ;;  %v2168_v35 = vand.u32 4294901760, %v6936_v62 }
 0x110   : > { %5170 = vmatprep.subr.bf16.mxu1 %v6852_v1 }
 0x111   : > { %1782 = vmatmul.mubr.f32.vlgmr.msra.gmra.mrb[8].mxu0 %v6804_v4  ;;  %v8613_v4 = vand.u32 4294901760, %v6682_v18  ;;  %v359_v18 = vld [vmem:[%s5994_s26 + $0x2a8] sm:$0xff] }
 0x112   : > { %5176 = vmatpush3.bf16.msra.mxu0 %v5175_v46  ;;  %2056 = vmatprep.mubr.f32.mxu0 %v8596_v16  ;;  %v2171_v46 = vand.u32 4294901760, %v339_v25 }
 0x113   : > { %5178 = vmatprep.subr.bf16.mxu0 %v5177_v10  ;;  %5172 = vmatpush3.bf16.msra.mxu1 %v6864_v20  ;;  %v8602_v10 = vand.u32 4294901760, %v6578_v28  ;;  %v6981_v28 = vsub.f32 %v6936_v62, %v2168_v35  ;;  %v8612_v62 = vand.u32 4294901760, %v8584_v60  ;;  %v8617_v60 = vand.u32 4294901760, %v6762_v63 }
 0x114   : > { %5206 = vmatprep.subr.bf16.mxu1 %v6485_v34  ;;  %v5189_v34 = vpack.c.bf16 %v8606_v32, %v8605_v11  ;;  %v8609_v32 = vand.u32 4294901760, %v8581_v27  ;;  %v8610_v11 = vand.u32 4294901760, %v8582_v3  ;;  %v7000_v51 = vsub.f32 %v339_v25, %v2171_v46 }
 0x115   : > { %v5185_v39 = vpack.c.bf16 %v8602_v10, %v8601_v44  ;;  %v8615_v3 = vand.u32 4294901760, %v6717_v57  ;;  %v8618_v25 = vand.u32 4294901760, %v6767_v17  ;;  %v8619_v57 = vand.u32 4294901760, %v6774_v12 }
 0x116   : > { %5180 = vmatpush3.bf16.msra.mxu0 %v5179_v59  ;;  %1890 = vmatmul.mubr.f32.vlgmr.msra.gmra.mrb[8].mxu1 %v8608_v50  ;;  %v6992_v8 = vpack.c.bf16 %v8610_v11, %v8609_v32  ;;  %v6998_v59 = vpack.c.bf16 %v8612_v62, %v8611_v33  ;;  %v8621_v63 = vand.u32 4294901760, %v6796_v15  ;;  %v8622_v17 = vand.u32 4294901760, %v6799_v48  ;;  %v7042_v33 = vld [vmem:[%s5986_s17] sm:$0xff] }
 0x117   : > { %5182 = vmatprep.subr.bf16.mxu0 %v5181_v5  ;;  %5208 = vmatpush3.bf16.msra.mxu1 %v6492_v19  ;;  %v8614_v5 = vand.u32 4294901760, %v6712_v36  ;;  %v7013_v44 = vpack.c.bf16 %v8616_v49, %v8615_v3  ;;  %v7019_v10 = vpack.c.bf16 %v8618_v25, %v8617_v60  ;;  %v2225_v19 = vand.u32 4294901760, %v357_v54  ;;  %v358_v36 = vld [vmem:[%s5994_s26 + $0x2a0] sm:$0xff]  ;;  %v343_v25 = vld [vmem:[%s5994_s26 + $0x228] sm:$0xff] }
 0x118   : > { %2160 = vmatprep.mubr.f32.mxu1 %v8596_v16  ;;  %5210 = vmatprep.subr.bf16.mxu1 %v6494_v30  ;;  %v7029_v0 = vpack.c.bf16 %v8620_v7, %v8619_v57  ;;  %v7035_v31 = vpack.c.bf16 %v8622_v17, %v8621_v63  ;;  %v2174_v50 = vand.u32 4294901760, %v340_v61  ;;  %v2177_v32 = vand.u32 4294901760, %v341_v41  ;;  %v342_v30 = vld [vmem:[%s5994_s26 + $0x220] sm:$0xff]  ;;  %v360_v7 = vld [vmem:[%s5994_s26 + $0x2b0] sm:$0xff] }
 0x119   : > { %v7007_v27 = vpack.c.bf16 %v8614_v5, %v8613_v4  ;;  %v8373_v16 = vand.u32 4294901760, %v6975_v52  ;;  %v8372_v11 = vand.u32 4294901760, %v6978_v42  ;;  %v8367_v12 = vand.u32 4294901760, %v6981_v28  ;;  %v344_v17 = vld [vmem:[%s5994_s26 + $0x230] sm:$0xff] }
 0x11a   : > { %5184 = vmatpush3.bf16.msra.mxu0 %v5183_v58  ;;  %v426_v40 = vrot.slane %v7042_v33, %v8365_v38  ;;  %v7047_v15 = vsub.f32 %v356_v22, %v2222_v2  ;;  %v2228_v48 = vand.u32 4294901760, %v358_v36  ;;  %v2231_v58 = vand.u32 4294901760, %v359_v18 }
 0x11b   : > { %5186 = vmatprep.subr.bf16.mxu0 %v5185_v39  ;;  %v8366_v62 = vand.u32 4294901760, %v7000_v51  ;;  %5212 = vmatpush3.bf16.msra.mxu1 %v8579_v23  ;;  %v7051_v4 = vpack.c.bf16 %v2219_v29, %v2216_v45  ;;  %v7053_v5 = vpack.c.bf16 %v2171_v46, %v2168_v35  ;;  %v7055_v3 = vpack.c.bf16 %v2225_v19, %v2222_v2  ;;  %v361_v23 = vld [vmem:[%s5994_s26 + $0x2b8] sm:$0xff] }
 0x11c   : > { %v7057_v49 = vsub.f32 %v357_v54, %v2225_v19  ;;  %5214 = vmatprep.subr.bf16.mxu1 %v8580_v21  ;;  %v7060_v39 = vpack.c.bf16 %v2177_v32, %v2174_v50  ;;  %v7062_v22 = vsub.f32 %v340_v61, %v2174_v50  ;;  %v7064_v60 = vsub.f32 %v341_v41, %v2177_v32  ;;  %v345_v50 = vld [vmem:[%s5994_s26 + $0x238] sm:$0xff] }
 0x11d   : > { %v2180_v57 = vand.u32 4294901760, %v342_v30  ;;  %v2395_v54 = vsub.f32 %v6975_v52, %v8373_v16  ;;  %v2402_v21 = vsub.f32 %v6978_v42, %v8372_v11  ;;  %v2283_v45 = vsub.f32 %v6981_v28, %v8367_v12  ;;  %v364_v11 = vld [vmem:[%s5994_s26 + $0x2d0] sm:$0xff] }
 0x11e   : > { %8623 = vst [vmem:[#allocation16_spill] sm:$0xff] %v7060_v39  ;;  %5188 = vmatpush3.bf16.msra.mxu0 %v5187_v56  ;;  %v7078_v29 = vand.u32 4294901760, %v426_v40  ;;  %v7080_v35 = vpack.c.bf16 %v2231_v58, %v2228_v48  ;;  %v7082_v46 = vsub.f32 %v358_v36, %v2228_v48  ;;  %v2290_v56 = vsub.f32 %v7000_v51, %v8366_v62 }
 0x11f   : > { %5190 = vmatprep.subr.bf16.mxu0 %v5189_v34  ;;  %v8371_v61 = vand.u32 4294901760, %v7047_v15  ;;  %5216 = vmatpush3.bf16.msra.mxu1 %v8585_v24  ;;  %v2183_v41 = vand.u32 4294901760, %v343_v25  ;;  %v2234_v2 = vand.u32 4294901760, %v360_v7  ;;  %v2237_v19 = vand.u32 4294901760, %v361_v23 }
 0x120   : > { %8624 = vst [vmem:[#allocation17_spill] sm:$0xff] %v7078_v29  ;;  %8625 = vst [vmem:[#allocation20_spill] sm:$0xff] %v7080_v35  ;;  %v8369_v63 = vand.u32 4294901760, %v7057_v49  ;;  %5218 = vmatprep.subr.bf16.mxu1 %v8586_v53  ;;  %v7093_v34 = vsub.f32 %v359_v18, %v2231_v58  ;;  %v7095_v36 = vsub.f32 %v342_v30, %v2180_v57  ;;  %v8368_v32 = vand.u32 4294901760, %v7062_v22 }
 0x121   : > { %v8370_v48 = vand.u32 4294901760, %v7064_v60  ;;  %v2396_v24 = vand.u32 4294901760, %v2395_v54  ;;  %v2403_v38 = vand.u32 4294901760, %v2402_v21  ;;  %v2284_v62 = vand.u32 4294901760, %v2283_v45 }
 0x122   : > { %5192 = vmatpush3.bf16.msra.mxu0 %v6992_v8  ;;  %v7101_v12 = vsub.f32 %v426_v40, %v7078_v29  ;;  %v2291_v53 = vand.u32 4294901760, %v2290_v56  ;;  %v2409_v18 = vsub.f32 %v7047_v15, %v8371_v61  ;;  %v2186_v30 = vand.u32 4294901760, %v344_v17  ;;  %v362_v40 = vld [vmem:[%s5994_s26 + $0x2c0] sm:$0xff] }
 0x123   : > { %5194 = vmatprep.subr.bf16.mxu0 %v6998_v59  ;;  %v2189_v58 = vand.u32 4294901760, %v345_v50  ;;  %5220 = vmatpush3.bf16.msra.mxu1 %v6582_v13  ;;  %v7108_v8 = vpack.c.bf16 %v2183_v41, %v2180_v57  ;;  %v7110_v54 = vsub.f32 %v343_v25, %v2183_v41  ;;  %v7112_v21 = vpack.c.bf16 %v2237_v19, %v2234_v2  ;;  %v363_v57 = vld [vmem:[%s5994_s26 + $0x2c8] sm:$0xff] }
 0x124   : > { %v2416_v59 = vsub.f32 %v7057_v49, %v8369_v63  ;;  %5222 = vmatprep.subr.bf16.mxu1 %v8587_v26  ;;  %v7119_v45 = vsub.f32 %v360_v7, %v2234_v2  ;;  %v7121_v56 = vsub.f32 %v361_v23, %v2237_v19  ;;  %v2297_v13 = vsub.f32 %v7062_v22, %v8368_v32  ;;  %v346_v23 = vld [vmem:[%s5994_s26 + $0x240] sm:$0xff] }
 0x125   : > { %8626 = vst [vmem:[#allocation21_spill] sm:$0xff] %v7108_v8  ;;  %8627 = vst [vmem:[#allocation12_spill] sm:$0xff] %v7112_v21  ;;  %v2304_v25 = vsub.f32 %v7064_v60, %v8370_v48  ;;  %v7131_v41 = vpack.c.bf16 %v2403_v38, %v2396_v24  ;;  %v8375_v26 = vand.u32 4294901760, %v7082_v46  ;;  %v8374_v7 = vand.u32 4294901760, %v7093_v34  ;;  %v347_v24 = vld [vmem:[%s5994_s26 + $0x248] sm:$0xff] }
 0x126   : > { %8628 = vst [vmem:[#allocation13_spill] sm:$0xff] %v7121_v56  ;;  %5196 = vmatpush3.bf16.msra.mxu0 %v7007_v27  ;;  %v8376_v2 = vand.u32 4294901760, %v7101_v12  ;;  %v7138_v19 = vpack.c.bf16 %v2291_v53, %v2284_v62  ;;  %v2410_v32 = vand.u32 4294901760, %v2409_v18  ;;  %v7140_v63 = vpack.c.bf16 %v2189_v58, %v2186_v30 }
 0x127   : > { %5198 = vmatprep.subr.bf16.mxu0 %v7013_v44  ;;  %v2240_v48 = vand.u32 4294901760, %v362_v40  ;;  %5224 = vmatpush3.bf16.msra.mxu1 %v6633_v14  ;;  %v2417_v38 = vand.u32 4294901760, %v2416_v59  ;;  %v2243_v27 = vand.u32 4294901760, %v363_v57  ;;  %v8377_v61 = vand.u32 4294901760, %v7095_v36 }
 0x128   : > { %5226 = vmatprep.subr.bf16.mxu1 %v6675_v43  ;;  %v7147_v44 = vsub.f32 %v344_v17, %v2186_v30  ;;  %v2298_v62 = vand.u32 4294901760, %v2297_v13  ;;  %v2305_v53 = vand.u32 4294901760, %v2304_v25  ;;  %v2192_v18 = vand.u32 4294901760, %v346_v23  ;;  %v7191_v30 = vld [vmem:[%s5994_s26 + $0x258] sm:$0xff] }
 0x129   : > { %v7150_v16 = vsub.f32 %v345_v50, %v2189_v58  ;;  %v2423_v14 = vsub.f32 %v7082_v46, %v8375_v26  ;;  %v2430_v59 = vsub.f32 %v7093_v34, %v8374_v7  ;;  %v2266_v43 = vsub.f32 %v7101_v12, %v8376_v2  ;;  %v365_v50 = vld [vmem:[%s5994_s26 + $0x2d8] sm:$0xff] }
 0x12a   : > { %8629 = vst [vmem:[#allocation22_spill] sm:$0xff] %v7147_v44  ;;  %5200 = vmatpush3.bf16.msra.mxu0 %v7019_v10  ;;  %v7163_v17 = vsub.f32 %v362_v40, %v2240_v48  ;;  %v2195_v10 = vand.u32 4294901760, %v347_v24  ;;  %v7169_v13 = vpack.c.bf16 %v2417_v38, %v2410_v32  ;;  %v7171_v25 = vpack.c.bf16 %v2243_v27, %v2240_v48 }
 0x12b   : > { %8630 = vst [vmem:[#allocation23_spill] sm:$0xff] %v7150_v16  ;;  %5202 = vmatprep.subr.bf16.mxu0 %v7029_v0  ;;  %5228 = vmatpush3.bf16.msra.mxu1 %v6816_v55  ;;  %v2311_v0 = vsub.f32 %v7095_v36, %v8377_v61  ;;  %v8633_v40 = vand.u32 4294901760, %v7110_v54  ;;  %v7180_v26 = vpack.c.bf16 %v2305_v53, %v2298_v62  ;;  %v2246_v55 = vand.u32 4294901760, %v364_v11  ;;  %v7188_v61 = vld [vmem:[%s5994_s26 + $0x250] sm:$0xff] }
 0x12c   : > { %8631 = vst [vmem:[#allocation24_spill] sm:$0xff] %v7163_v17  ;;  %8632 = vst [vmem:[#allocation25_spill] sm:$0xff] %v7171_v25  ;;  %5230 = vmatprep.subr.bf16.mxu1 %v6822_v6  ;;  %v7182_v2 = vsub.f32 %v363_v57, %v2243_v27  ;;  %v7184_v58 = vsub.f32 %v346_v23, %v2192_v18  ;;  %v2424_v32 = vand.u32 4294901760, %v2423_v14  ;;  %v2431_v48 = vand.u32 4294901760, %v2430_v59 }
 0x12d   : > { %v2318_v7 = vsub.f32 %v7110_v54, %v8633_v40  ;;  %v2249_v38 = vand.u32 4294901760, %v365_v50  ;;  %v2267_v40 = vand.u32 4294901760, %v2266_v43  ;;  %v7194_v6 = vpack.c.bf16 %v2195_v10, %v2192_v18  ;;  %v7208_v43 = vld [vmem:[%s5994_s26 + $0x2e0] sm:$0xff] }
 0x12e   : > { %8634 = vst [vmem:[#allocation14_spill] sm:$0xff] %v7182_v2  ;;  %8635 = vst [vmem:[#allocation18_spill] sm:$0xff] %v7184_v58  ;;  %5204 = vmatpush3.bf16.msra.mxu0 %v7035_v31  ;;  %v8636_v57 = vand.u32 4294901760, %v7119_v45  ;;  %v8637_v31 = vand.u32 4294901760, %v7121_v56  ;;  %v7204_v53 = vsub.f32 %v347_v24, %v2195_v10  ;;  %v2312_v14 = vand.u32 4294901760, %v2311_v0  ;;  %v7221_v24 = vld [vmem:[%s5994_s26 + $0x260] sm:$0xff] }
 0x12f   : > { %5238 = vmatprep.subr.bf16.mxu0 %v7051_v4  ;;  %5232 = vmatpush3.bf16.msra.mxu1 %v6845_v47  ;;  %v2319_v59 = vand.u32 4294901760, %v2318_v7  ;;  %v5277_v7 = vpack.c.bf16 %v2431_v48, %v2424_v32  ;;  %v7224_v10 = vpack.c.bf16 %v2249_v38, %v2246_v55  ;;  %v7226_v0 = vsub.f32 %v365_v50, %v2249_v38  ;;  %v7270_v48 = vld [vmem:[%s5994_s26 + $0x2f8] sm:$0xff] }
 0x130   : > { %v2437_v23 = vsub.f32 %v7119_v45, %v8636_v57  ;;  %v2444_v27 = vsub.f32 %v7121_v56, %v8637_v31  ;;  %8638 = vst [vmem:[#allocation19_spill] sm:$0xff] %v7204_v53  ;;  %5234 = vmatprep.subr.bf16.mxu1 %v6852_v1  ;;  %v7212_v57 = vsub.f32 %v364_v11, %v2246_v55  ;;  %v7217_v56 = vld [vmem:[%s5994_s26 + $0x2e8] sm:$0xff]  ;;  %v8380_v1 = vand.u32 4294901760, %v7182_v2 }
 0x131   : > { %2058 = vmatmul.mubr.f32.vlgmr.msra.gmra.mrb[10].mxu0 %v6781_v37  ;;  %8640 = vst [vmem:[#allocation26_spill] sm:$0xff] %v7226_v0  ;;  %v8641_v31 = vand.u32 4294901760, %v7147_v44  ;;  %v7235_v50 = vpack.c.bf16 %v2319_v59, %v2312_v14  ;;  %v8642_v55 = vand.u32 4294901760, %v7150_v16  ;;  %v8645_v14 = vand.u32 4294901760, %v7163_v17 }
 0x132   : > { %8639 = vst [vmem:[#allocation15_spill] sm:$0xff] %v7212_v57  ;;  %5240 = vmatpush3.bf16.msra.mxu0 %v7053_v5  ;;  %2268 = vmatprep.mubr.f32.mxu0 %v2267_v40  ;;  %v2438_v11 = vand.u32 4294901760, %v2437_v23  ;;  %v2445_v62 = vand.u32 4294901760, %v2444_v27  ;;  %v8643_v40 = vand.u32 4294901760, %v7188_v61 }
 0x133   : > { %5242 = vmatprep.subr.bf16.mxu0 %v7055_v3  ;;  %v2325_v47 = vsub.f32 %v7147_v44, %v8641_v31  ;;  %5236 = vmatpush3.bf16.msra.mxu1 %v6864_v20  ;;  %v2332_v32 = vsub.f32 %v7150_v16, %v8642_v55  ;;  %v8644_v20 = vand.u32 4294901760, %v7191_v30  ;;  %v2451_v59 = vsub.f32 %v7163_v17, %v8645_v14  ;;  %v7257_v31 = vld [vmem:[%s5994_s26 + $0x268] sm:$0xff] }
 0x134   : > { %5270 = vmatprep.subr.bf16.mxu1 %v7131_v41  ;;  %v7246_v23 = vsub.f32 %v7188_v61, %v8643_v40  ;;  %v2458_v41 = vsub.f32 %v7182_v2, %v8380_v1  ;;  %v5281_v55 = vpack.c.bf16 %v2445_v62, %v2438_v11  ;;  %v8646_v1 = vand.u32 4294901760, %v7208_v43 }
 0x135   : > { %v7251_v27 = vsub.f32 %v7191_v30, %v8644_v20  ;;  %v7267_v20 = vld [vmem:[%s5994_s26 + $0x2f0] sm:$0xff]  ;;  %v2326_v18 = vand.u32 4294901760, %v2325_v47  ;;  %v8647_v14 = vand.u32 4294901760, %v7217_v56  ;;  %v8648_v62 = vand.u32 4294901760, %v7221_v24 }
 0x136   : > { %5244 = vmatpush3.bf16.msra.mxu0 %v7060_v39  ;;  %2162 = vmatmul.mubr.f32.vlgmr.msra.gmra.mrb[10].mxu1 %v6781_v37  ;;  %v7278_v40 = vsub.f32 %v7208_v43, %v8646_v1  ;;  %v2333_v39 = vand.u32 4294901760, %v2332_v32  ;;  %v2452_v1 = vand.u32 4294901760, %v2451_v59  ;;  %v7298_v32 = vld [vmem:[%s5994_s26 + $0x270] sm:$0xff]  ;;  %v8651_v59 = vand.u32 4294901760, %v7204_v53 }
 0x137   : > { %5246 = vmatprep.subr.bf16.mxu0 %v7080_v35  ;;  %5272 = vmatpush3.bf16.msra.mxu1 %v7138_v19  ;;  %v7285_v37 = vsub.f32 %v7217_v56, %v8647_v14  ;;  %v7291_v47 = vsub.f32 %v7221_v24, %v8648_v62  ;;  %v7301_v14 = vld [vmem:[%s5994_s26 + $0x278] sm:$0xff]  ;;  %v8649_v35 = vsub.s32 4, %v8607_v9  ;;  %v2459_v62 = vand.u32 4294901760, %v2458_v41 }
 0x138   : > { %2504 = vmatprep.mubr.f32.mxu1 %v7078_v29  ;;  %5274 = vmatprep.subr.bf16.mxu1 %v7169_v13  ;;  %v8650_v29 = vand.u32 4294901760, %v7184_v58  ;;  %v2346_v19 = vsub.f32 %v7204_v53, %v8651_v59  ;;  %v8652_v11 = vand.u32 4294901760, %v7212_v57  ;;  %v8653_v9 = vand.u32 4294901760, %v7226_v0 }
 0x139   : > { %v422_v38 = vrot.slane %v7042_v33, %v8649_v35  ;;  %v8654_v59 = vand.u32 4294901760, %v7257_v31  ;;  %v8660_v44 = vand.u32 4294901760, %v7278_v40 }
 0x13a   : > { %5248 = vmatpush3.bf16.msra.mxu0 %v7108_v8  ;;  %v2339_v13 = vsub.f32 %v7184_v58, %v8650_v29  ;;  %v2465_v2 = vsub.f32 %v7212_v57, %v8652_v11  ;;  %v2472_v35 = vsub.f32 %v7226_v0, %v8653_v9  ;;  %v5283_v58 = vpack.c.bf16 %v2333_v39, %v2326_v18 }
 0x13b   : > { %5250 = vmatprep.subr.bf16.mxu0 %v7112_v21  ;;  %5276 = vmatpush3.bf16.msra.mxu1 %v7180_v26  ;;  %v7327_v53 = vsub.f32 %v7257_v31, %v8654_v59  ;;  %v2210_v11 = vand.u32 4294901760, %v7298_v32  ;;  %v2213_v21 = vand.u32 4294901760, %v7301_v14  ;;  %v8655_v9 = vand.u32 4294901760, %v7267_v20 }
 0x13c   : > { %5278 = vmatprep.subr.bf16.mxu1 %v5277_v7  ;;  %v8656_v29 = vand.u32 4294901760, %v7270_v48  ;;  %v7341_v39 = vand.u32 4294901760, %v422_v38  ;;  %v5285_v59 = vpack.c.bf16 %v2459_v62, %v2452_v1  ;;  %v2340_v8 = vand.u32 4294901760, %v2339_v13 }
 0x13d   : > { %v7334_v41 = vsub.f32 %v7267_v20, %v8655_v9  ;;  %v2347_v0 = vand.u32 4294901760, %v2346_v19  ;;  %v2466_v7 = vand.u32 4294901760, %v2465_v2  ;;  %v2473_v57 = vand.u32 4294901760, %v2472_v35 }
 0x13e   : > { %v7339_v26 = vsub.f32 %v7270_v48, %v8656_v29  ;;  %8657 = vst [vmem:[#allocation27_spill] sm:$0xff] %v7341_v39  ;;  %5252 = vmatpush3.bf16.msra.mxu0 %v7140_v63  ;;  %v8658_v9 = vand.u32 4294901760, %v7246_v23  ;;  %v8659_v29 = vand.u32 4294901760, %v7251_v27  ;;  %v2479_v18 = vsub.f32 %v7278_v40, %v8660_v44 }
 0x13f   : > { %5254 = vmatprep.subr.bf16.mxu0 %v7171_v25  ;;  %5280 = vmatpush3.bf16.msra.mxu1 %v7235_v50  ;;  %v7357_v1 = vsub.f32 %v7298_v32, %v2210_v11  ;;  %v7360_v2 = vsub.f32 %v7301_v14, %v2213_v21  ;;  %v7365_v13 = vsub.f32 %v422_v38, %v7341_v39  ;;  %v8661_v35 = vand.u32 4294901760, %v7285_v37 }
 0x140   : > { %v2353_v17 = vsub.f32 %v7246_v23, %v8658_v9  ;;  %v2360_v16 = vsub.f32 %v7251_v27, %v8659_v29  ;;  %5282 = vmatprep.subr.bf16.mxu1 %v5281_v55  ;;  %v8662_v14 = vand.u32 4294901760, %v7188_v61  ;;  %v8663_v9 = vand.u32 4294901760, %v7191_v30 }
 0x141   : > { %v2486_v44 = vsub.f32 %v7285_v37, %v8661_v35  ;;  %v8664_v55 = vand.u32 4294901760, %v7208_v43  ;;  %v8665_v38 = vand.u32 4294901760, %v7217_v56  ;;  %v5287_v19 = vpack.c.bf16 %v2347_v0, %v2340_v8 }
 0x142   : > { %5256 = vmatpush3.bf16.msra.mxu0 %v7194_v6  ;;  %v7377_v29 = vpack.c.bf16 %v8663_v9, %v8662_v14  ;;  %v5289_v35 = vpack.c.bf16 %v2473_v57, %v2466_v7  ;;  %v2354_v50 = vand.u32 4294901760, %v2353_v17  ;;  %v2361_v32 = vand.u32 4294901760, %v2360_v16 }
 0x143   : > { %v7383_v62 = vpack.c.bf16 %v8665_v38, %v8664_v55  ;;  %5258 = vmatprep.subr.bf16.mxu0 %v7224_v10  ;;  %v2480_v25 = vand.u32 4294901760, %v2479_v18  ;;  %5284 = vmatpush3.bf16.msra.mxu1 %v5283_v58  ;;  %v8667_v61 = vand.u32 4294901760, %v7291_v47  ;;  %v8668_v14 = vand.u32 4294901760, %v7327_v53 }
 0x144   : > { %v8411_v56 = vand.u32 4294901760, %v7357_v1  ;;  %v8410_v9 = vand.u32 4294901760, %v7360_v2  ;;  %5286 = vmatprep.subr.bf16.mxu1 %v5285_v59  ;;  %v8412_v8 = vand.u32 4294901760, %v7365_v13  ;;  %v2487_v57 = vand.u32 4294901760, %v2486_v44 }
 0x145   : > { %8666 = vst [vmem:[#allocation28_spill] sm:$0xff] %v7383_v62  ;;  %v2367_v30 = vsub.f32 %v7291_v47, %v8667_v61  ;;  %v2374_v43 = vsub.f32 %v7327_v53, %v8668_v14  ;;  %v8669_v16 = vand.u32 4294901760, %v7334_v41  ;;  %v8670_v58 = vand.u32 4294901760, %v7339_v26 }
 0x146   : > { %5260 = vmatpush3.bf16.msra.mxu0 %v7377_v29  ;;  %v8671_v18 = vand.u32 4294901760, %v7221_v24  ;;  %v8672_v7 = vand.u32 4294901760, %v7257_v31  ;;  %v8673_v59 = vand.u32 4294901760, %v7267_v20  ;;  %v8674_v44 = vand.u32 4294901760, %v7270_v48 }
 0x147   : > { %v2493_v17 = vsub.f32 %v7334_v41, %v8669_v16  ;;  %v2500_v0 = vsub.f32 %v7339_v26, %v8670_v58  ;;  %5262 = vmatprep.subr.bf16.mxu0 %v7383_v62  ;;  %v5291_v61 = vpack.c.bf16 %v2361_v32, %v2354_v50  ;;  %5288 = vmatpush3.bf16.msra.mxu1 %v5287_v19  ;;  %v2368_v14 = vand.u32 4294901760, %v2367_v30 }
 0x148   : > { %v7406_v55 = vpack.c.bf16 %v8672_v7, %v8671_v18  ;;  %v7413_v38 = vpack.c.bf16 %v8674_v44, %v8673_v59  ;;  %v2375_v16 = vand.u32 4294901760, %v2374_v43  ;;  %v2381_v24 = vsub.f32 %v7357_v1, %v8411_v56  ;;  %5290 = vmatprep.subr.bf16.mxu1 %v5289_v35 }
 0x149   : > { %v2388_v31 = vsub.f32 %v7360_v2, %v8410_v9  ;;  %v2272_v20 = vsub.f32 %v7365_v13, %v8412_v8  ;;  %v5293_v48 = vpack.c.bf16 %v2487_v57, %v2480_v25  ;;  %v2494_v58 = vand.u32 4294901760, %v2493_v17 }
 0x14a   : > { %8675 = vst [vmem:[#allocation29_spill] sm:$0xff] %v7413_v38  ;;  %v2501_v18 = vand.u32 4294901760, %v2500_v0  ;;  %5264 = vmatpush3.bf16.msra.mxu0 %v7406_v55  ;;  %v7425_v19 = vpack.c.bf16 %v2213_v21, %v2210_v11  ;;  %v5301_v50 = vpack.c.bf16 %v6978_v42, %v6975_v52  ;;  %v5295_v32 = vpack.c.bf16 %v2375_v16, %v2368_v14  ;;  %v8676_v14 = vld [vmem:[#allocation13_spill] sm:$0xff] }
 0x14b   : > { %5266 = vmatprep.subr.bf16.mxu0 %v7413_v38  ;;  %5292 = vmatpush3.bf16.msra.mxu1 %v5291_v61  ;;  %v2382_v30 = vand.u32 4294901760, %v2381_v24  ;;  %v2389_v35 = vand.u32 4294901760, %v2388_v31  ;;  %v201_v43 = vand.u32 2147483647, %v7042_v33  ;;  %v2273_v7 = vand.u32 4294901760, %v2272_v20  ;;  %v8678_v31 = vld [vmem:[#allocation22_spill] sm:$0xff] }
 0x14c   : > { %5294 = vmatprep.subr.bf16.mxu1 %v5293_v48  ;;  %v5297_v25 = vpack.c.bf16 %v2501_v18, %v2494_v58  ;;  %v5303_v21 = vpack.c.bf16 %v7000_v51, %v6981_v28  ;;  %v5305_v11 = vpack.c.bf16 %v7057_v49, %v7047_v15  ;;  %v5307_v0 = vpack.c.bf16 %v7064_v60, %v7062_v22  ;;  %v8679_v20 = vld [vmem:[#allocation23_spill] sm:$0xff]  ;;  %v8680_v58 = vld [vmem:[#allocation24_spill] sm:$0xff]  ;;  %v8681_v18 = vld [vmem:[#allocation14_spill] sm:$0xff] }
 0x14d   : > { %v5299_v57 = vpack.c.bf16 %v2389_v35, %v2382_v30  ;;  %v202_v17 = vsub.f32 0.0, %v201_v43  ;;  %v5309_v59 = vpack.c.bf16 %v7093_v34, %v7082_v46  ;;  %v5311_v61 = vpack.c.bf16 %v7110_v54, %v7095_v36  ;;  %v8683_v30 = vld [vmem:[#allocation20_spill] sm:$0xff]  ;;  %v8684_v35 = vld [vmem:[#allocation18_spill] sm:$0xff]  ;;  %v8685_v43 = vld [vmem:[#allocation19_spill] sm:$0xff] }
 0x14e   : > { %5268 = vmatpush3.bf16.msra.mxu0 %v7425_v19  ;;  %v5313_v16 = vpack.c.bf16 %v8676_v14, %v7119_v45  ;;  %v8677_v24 = vand.u32 4294901760, %v7101_v12  ;;  %v5315_v48 = vpack.c.bf16 %v8679_v20, %v8678_v31 }
 0x14f   : > { %5302 = vmatprep.subr.bf16.mxu0 %v5301_v50  ;;  %5296 = vmatpush3.bf16.msra.mxu1 %v5295_v32  ;;  %v203_v44 = vmul.f32 1.442695, %v202_v17  ;;  %v5317_v50 = vpack.c.bf16 %v8681_v18, %v8680_v58  ;;  %v8682_v32 = vld [vmem:[#allocation16_spill] sm:$0xff]  ;;  %v5323_v17 = vpack.c.bf16 %v7251_v27, %v7246_v23 }
 0x150   : > { %5298 = vmatprep.subr.bf16.mxu1 %v5297_v25  ;;  %v8687_v25 = vld [vmem:[#allocation26_spill] sm:$0xff] }
 0x151   : > { %2274 = vmatmul.mubr.f32.vlgmr.msra.gmra.mrb[12].mxu0 %v2273_v7  ;;  %5674 = vpow2.f32 %v203_v44  ;;  %v8686_v7 = vld [vmem:[#allocation15_spill] sm:$0xff] }
 0x152   : > { %5304 = vmatpush3.bf16.msra.mxu0 %v5303_v21  ;;  %2641 = vmatprep.mubr.f32.mxu0 %v7101_v12  ;;  %v5319_v12 = vpack.c.bf16 %v8685_v43, %v8684_v35  ;;  %v5321_v21 = vpack.c.bf16 %v8687_v25, %v8686_v7 }
 0x153   : > { %5306 = vmatprep.subr.bf16.mxu0 %v5305_v11  ;;  %5300 = vmatpush3.bf16.msra.mxu1 %v5299_v57  ;;  %v8688_v11 = vld [vmem:[#allocation21_spill] sm:$0xff]  ;;  %v8689_v57 = vld [vmem:[#allocation12_spill] sm:$0xff] }
 0x154   : > { %5334 = vmatprep.subr.bf16.mxu1 %v7051_v4 }
 0x156   : > { %5308 = vmatpush3.bf16.msra.mxu0 %v5307_v0  ;;  %2506 = vmatmul.mubr.f32.vlgmr.msra.gmra.mrb[12].mxu1 %v7341_v39 }
 0x157   : > { %5310 = vmatprep.subr.bf16.mxu0 %v5309_v59  ;;  %5336 = vmatpush3.bf16.msra.mxu1 %v7053_v5  ;;  %v5325_v59 = vpack.c.bf16 %v7285_v37, %v7278_v40 }
 0x158   : > { %2748 = vmatprep.mubr.f32.mxu1 %v8677_v24  ;;  %5338 = vmatprep.subr.bf16.mxu1 %v7055_v3 }
 0x15a   : > { %5312 = vmatpush3.bf16.msra.mxu0 %v5311_v61  ;;  %v8691_v61 = vld [vmem:[#allocation25_spill] sm:$0xff] }
 0x15b   : > { %5314 = vmatprep.subr.bf16.mxu0 %v5313_v16  ;;  %5340 = vmatpush3.bf16.msra.mxu1 %v8682_v32  ;;  %v7465_v0 = vpop.eup %5674 }
 0x15c   : > { %5342 = vmatprep.subr.bf16.mxu1 %v8683_v30  ;;  %8690 = vst [vmem:[#allocation13_spill] sm:$0xff] %v7465_v0  ;;  %v205_v24 = vadd.f32 1.0, %v7465_v0  ;;  %v208_v9 = vmul.f32 -0.5, %v7465_v0 }
 0x15e   : > { %5316 = vmatpush3.bf16.msra.mxu0 %v5315_v48  ;;  %v5327_v48 = vpack.c.bf16 %v7327_v53, %v7291_v47  ;;  %5676 = vlog2.f32 %v205_v24  ;;  %v7488_v24 = vld [vmem:[%s5994_s26 + $0x380] sm:$0xff] }
 0x15f   : > { %5318 = vmatprep.subr.bf16.mxu0 %v5317_v50  ;;  %5344 = vmatpush3.bf16.msra.mxu1 %v8688_v11 }
 0x160   : > { %5346 = vmatprep.subr.bf16.mxu1 %v8689_v57 }
 0x162   : > { %5320 = vmatpush3.bf16.msra.mxu0 %v5319_v12  ;;  %v5329_v12 = vpack.c.bf16 %v7339_v26, %v7334_v41 }
 0x163   : > { %5322 = vmatprep.subr.bf16.mxu0 %v5321_v21  ;;  %5348 = vmatpush3.bf16.msra.mxu1 %v7140_v63 }
 0x164   : > { %v4045_v44 = vpop.f32.mrb[0].mxu0  ;;  %5350 = vmatprep.subr.bf16.mxu1 %v8691_v61 }
 0x165   : > { %v4046_v16 = vpop.f32.mrb[1].mxu0 }
 0x166   : > { %5324 = vmatpush3.bf16.msra.mxu0 %v5323_v17  ;;  %v4047_v50 = vadd.f32 %v4046_v16, %v4045_v44  ;;  %v5331_v17 = vpack.c.bf16 %v7360_v2, %v7357_v1  ;;  %v8693_v16 = vand.u32 4294901760, %v6978_v42  ;;  %v8695_v42 = vand.u32 4294901760, %v7000_v51  ;;  %v389_v51 = vld [vmem:[%s5994_s26 + $0x398] sm:$0xff] }
 0x167   : > { %5326 = vmatprep.subr.bf16.mxu0 %v5325_v59  ;;  %5352 = vmatpush3.bf16.msra.mxu1 %v7194_v6  ;;  %v4080_v21 = vpop.f32.mrb[0].mxu1  ;;  %v8692_v59 = vand.u32 4294901760, %v6975_v52  ;;  %v8694_v52 = vand.u32 4294901760, %v6981_v28  ;;  %v388_v28 = vld [vmem:[%s5994_s26 + $0x390] sm:$0xff] }
 0x168   : > { %5354 = vmatprep.subr.bf16.mxu1 %v7224_v10  ;;  %v4081_v44 = vpop.f32.mrb[1].mxu1 }
 0x169   : > { %v5365_v56 = vpack.c.bf16 %v8693_v16, %v8692_v59  ;;  %v4082_v8 = vadd.f32 %v4081_v44, %v4080_v21  ;;  %v209_v59 = vadd.f32 1.0, %v208_v9  ;;  %v8696_v21 = vand.u32 4294901760, %v7047_v15 }
 0x16a   : > { %5328 = vmatpush3.bf16.msra.mxu0 %v5327_v48  ;;  %v7491_v48 = vld [vmem:[%s5994_s26 + $0x388] sm:$0xff]  ;;  %v8697_v44 = vand.u32 4294901760, %v7057_v49  ;;  %v8699_v9 = vand.u32 4294901760, %v7064_v60  ;;  %v8703_v15 = vand.u32 4294901760, %v7093_v34  ;;  %v3084_v34 = vand.u32 4294901760, %v388_v28 }
 0x16b   : > { %5330 = vmatprep.subr.bf16.mxu0 %v5329_v12  ;;  %5356 = vmatpush3.bf16.msra.mxu1 %v7377_v29  ;;  %v7493_v39 = vadd.f32 %v4082_v8, %v4047_v50  ;;  %v5367_v12 = vpack.c.bf16 %v8695_v42, %v8694_v52  ;;  %v3081_v50 = vand.u32 4294901760, %v7491_v48  ;;  %v8700_v42 = vld [vmem:[#allocation17_spill] sm:$0xff]  ;;  %v8702_v8 = vand.u32 4294901760, %v7082_v46 }
 0x16c   : > { %5358 = vmatprep.subr.bf16.mxu1 %v7383_v62  ;;  %v5369_v16 = vpack.c.bf16 %v8697_v44, %v8696_v21  ;;  %v7504_v62 = vld [vmem:[%s5994_s26 + $0x300] sm:$0xff]  ;;  %v7525_v44 = vmul.f32 %v7465_v0, %v209_v59  ;;  %v8706_v59 = vand.u32 4294901760, %v7488_v24  ;;  %v8713_v0 = vand.u32 4294901760, %v8684_v35 }
 0x16d   : > { %v3030_v21 = vand.u32 4294901760, %v7504_v62  ;;  %v7543_v46 = vsub.f32 %v7491_v48, %v3081_v50 }
 0x16e   : > { %5332 = vmatpush3.bf16.msra.mxu0 %v5331_v17  ;;  %v7510_v17 = vld [vmem:[%s5994_s26 + $0x308] sm:$0xff]  ;;  %8701 = vst [vmem:[#allocation22_spill] sm:$0xff] %v7525_v44  ;;  %v8712_v44 = vand.u32 4294901760, %v8681_v18  ;;  %v8718_v18 = vand.u32 4294901760, %v7251_v27 }
 0x16f   : > { %5366 = vmatprep.subr.bf16.mxu0 %v5365_v56  ;;  %5360 = vmatpush3.bf16.msra.mxu1 %v7406_v55  ;;  %v8698_v56 = vand.u32 4294901760, %v7062_v22  ;;  %v8705_v22 = vand.u32 4294901760, %v7110_v54  ;;  %v3033_v60 = vand.u32 4294901760, %v7510_v17  ;;  %v8707_v54 = vand.u32 4294901760, %v7119_v45 }
 0x170   : > { %5362 = vmatprep.subr.bf16.mxu1 %v7413_v38  ;;  %v5373_v38 = vpack.c.bf16 %v8703_v15, %v8702_v8  ;;  %v8708_v8 = vand.u32 4294901760, %v8676_v14  ;;  %v8715_v14 = vand.u32 4294901760, %v8686_v7  ;;  %v7577_v35 = vsub.f32 %v7504_v62, %v3030_v21 }
 0x171   : > { %2644 = vmatmul.mubr.f32.vlgmr.msra.gmra.mrb[14].mxu0 %v7365_v13  ;;  %v5371_v52 = vpack.c.bf16 %v8699_v9, %v8698_v56  ;;  %v5677_v56 = vpop.eup %5676  ;;  %v8709_v9 = vand.u32 4294901760, %v8678_v31  ;;  %v8716_v31 = vand.u32 4294901760, %v8687_v25  ;;  %v8720_v7 = vand.u32 4294901760, %v7365_v13  ;;  %v391_v13 = vld [vmem:[%s5994_s26 + $0x3a8] sm:$0xff] }
 0x172   : > { %5368 = vmatpush3.bf16.msra.mxu0 %v5367_v12  ;;  %2918 = vmatprep.mubr.f32.mxu0 %v8700_v42  ;;  %v8704_v12 = vand.u32 4294901760, %v7095_v36  ;;  %v3087_v36 = vand.u32 4294901760, %v389_v51  ;;  %v5377_v15 = vpack.c.bf16 %v8708_v8, %v8707_v54  ;;  %v8721_v25 = vand.u32 4294901760, %v7278_v40 }
 0x173   : > { %5370 = vmatprep.subr.bf16.mxu0 %v5369_v16  ;;  %5364 = vmatpush3.bf16.msra.mxu1 %v7425_v19  ;;  %v7540_v16 = vsub.f32 %v7488_v24, %v8706_v59  ;;  %v8711_v59 = vand.u32 4294901760, %v8680_v58  ;;  %v8717_v58 = vand.u32 4294901760, %v7246_v23  ;;  %v8722_v23 = vand.u32 4294901760, %v7285_v37 }
 0x174   : > { %v5375_v49 = vpack.c.bf16 %v8705_v22, %v8704_v12  ;;  %5398 = vmatprep.subr.bf16.mxu1 %v7051_v4  ;;  %v8710_v12 = vand.u32 4294901760, %v8679_v20  ;;  %v8714_v4 = vand.u32 4294901760, %v8685_v43  ;;  %v7568_v20 = vpack.c.bf16 %v8716_v31, %v8715_v14  ;;  %v372_v43 = vld [vmem:[%s5994_s26 + $0x310] sm:$0xff] }
 0x175   : > { %v5381_v48 = vpack.c.bf16 %v8712_v44, %v8711_v59  ;;  %v7574_v54 = vpack.c.bf16 %v8718_v18, %v8717_v58  ;;  %v373_v44 = vld [vmem:[%s5994_s26 + $0x318] sm:$0xff]  ;;  %v7590_v27 = vpack.c.bf16 %v8722_v23, %v8721_v25  ;;  %v8724_v62 = vand.u32 4294901760, %v7327_v53  ;;  %v374_v18 = vld [vmem:[%s5994_s26 + $0x320] sm:$0xff] }
 0x176   : > { %v5379_v22 = vpack.c.bf16 %v8710_v12, %v8709_v9  ;;  %v7562_v45 = vpack.c.bf16 %v8714_v4, %v8713_v0  ;;  %5372 = vmatpush3.bf16.msra.mxu0 %v5371_v52  ;;  %v8719_v0 = vld [vmem:[#allocation11_spill] sm:$0xff]  ;;  %v7582_v52 = vmul.f32 0.6931472, %v5677_v56  ;;  %2752 = vmatmul.mubr.f32.vlgmr.msra.gmra.mrb[14].mxu1 %v8720_v7  ;;  %v8723_v9 = vand.u32 4294901760, %v7291_v47 }
 0x177   : > { %v8424_v8 = vsub.s32 7, %v8719_v0  ;;  %5374 = vmatprep.subr.bf16.mxu0 %v5373_v38  ;;  %v7599_v59 = vsub.f32 %v7510_v17, %v3033_v60  ;;  %v390_v56 = vld [vmem:[%s5994_s26 + $0x3a0] sm:$0xff]  ;;  %5400 = vmatpush3.bf16.msra.mxu1 %v7053_v5  ;;  %v7604_v40 = vsub.f32 %v388_v28, %v3084_v34  ;;  %v7606_v37 = vsub.f32 %v389_v51, %v3087_v36 }
 0x178   : > { %v7596_v12 = vpack.c.bf16 %v8724_v62, %v8723_v9  ;;  %3022 = vmatprep.mubr.f32.mxu1 %v8700_v42  ;;  %v8423_v47 = vand.u32 4294901760, %v7540_v16  ;;  %v8422_v53 = vand.u32 4294901760, %v7543_v46  ;;  %5402 = vmatprep.subr.bf16.mxu1 %v7055_v3  ;;  %v8725_v38 = vand.u32 4294901760, %v7334_v41  ;;  %v375_v3 = vld [vmem:[%s5994_s26 + $0x328] sm:$0xff] }
 0x179   : > { %v8726_v17 = vand.u32 4294901760, %v7339_v26  ;;  %v8727_v5 = vand.u32 4294901760, %v7357_v1  ;;  %v8728_v28 = vand.u32 4294901760, %v7360_v2  ;;  %v3036_v14 = vand.u32 4294901760, %v372_v43 }
 0x17a   : > { %v3039_v42 = vand.u32 4294901760, %v373_v44  ;;  %5376 = vmatpush3.bf16.msra.mxu0 %v5375_v49  ;;  %v3090_v31 = vand.u32 4294901760, %v390_v56  ;;  %v3093_v58 = vand.u32 4294901760, %v391_v13  ;;  %v8421_v41 = vand.u32 4294901760, %v7577_v35 }
 0x17b   : > { %v7616_v4 = vpack.c.bf16 %v8726_v17, %v8725_v38  ;;  %v7622_v51 = vpack.c.bf16 %v8728_v28, %v8727_v5  ;;  %v434_v26 = vrot.slane %v7042_v33, %v8424_v8  ;;  %5378 = vmatprep.subr.bf16.mxu0 %v5377_v15  ;;  %v8729_v1 = vand.u32 4294901760, %v7488_v24  ;;  %5404 = vmatpush3.bf16.msra.mxu1 %v8682_v32  ;;  %v392_v24 = vld [vmem:[%s5994_s26 + $0x3b0] sm:$0xff]  ;;  %v393_v17 = vld [vmem:[%s5994_s26 + $0x3b8] sm:$0xff]  ;;  %v395_v8 = vld [vmem:[%s5994_s26 + $0x3c8] sm:$0xff] }
 0x17c   : > { %v7634_v7 = vpack.c.bf16 %v3033_v60, %v3030_v21  ;;  %v7636_v25 = vpack.c.bf16 %v3087_v36, %v3084_v34  ;;  %v8420_v49 = vand.u32 4294901760, %v7599_v59  ;;  %v3257_v23 = vsub.f32 %v7540_v16, %v8423_v47  ;;  %5406 = vmatprep.subr.bf16.mxu1 %v8683_v30 }
 0x17d   : > { %v7632_v2 = vpack.c.bf16 %v3081_v50, %v8729_v1  ;;  %v3264_v15 = vsub.f32 %v7543_v46, %v8422_v53  ;;  %v8418_v50 = vand.u32 4294901760, %v7604_v40  ;;  %v8419_v21 = vand.u32 4294901760, %v7606_v37 }
 0x17e   : > { %8730 = vst [vmem:[#allocation23_spill] sm:$0xff] %v7636_v25  ;;  %v7650_v60 = vsub.f32 %v372_v43, %v3036_v14  ;;  %v7652_v34 = vsub.f32 %v373_v44, %v3039_v42  ;;  %v3042_v32 = vand.u32 4294901760, %v374_v18  ;;  %v3045_v36 = vand.u32 4294901760, %v375_v3  ;;  %5380 = vmatpush3.bf16.msra.mxu0 %v5379_v22 }
 0x17f   : > { %v7654_v9 = vpack.c.bf16 %v3039_v42, %v3036_v14  ;;  %v7656_v62 = vpack.c.bf16 %v3093_v58, %v3090_v31  ;;  %v3145_v38 = vsub.f32 %v7577_v35, %v8421_v41  ;;  %v7662_v5 = vand.u32 4294901760, %v434_v26  ;;  %5382 = vmatprep.subr.bf16.mxu0 %v5381_v48  ;;  %5408 = vmatpush3.bf16.msra.mxu1 %v8688_v11 }
 0x180   : > { %v7664_v30 = vsub.f32 %v390_v56, %v3090_v31  ;;  %v7666_v43 = vsub.f32 %v391_v13, %v3093_v58  ;;  %v3152_v22 = vsub.f32 %v7599_v59, %v8420_v49  ;;  %v3096_v44 = vand.u32 4294901760, %v392_v24  ;;  %v376_v56 = vld [vmem:[%s5994_s26 + $0x330] sm:$0xff]  ;;  %v377_v13 = vld [vmem:[%s5994_s26 + $0x338] sm:$0xff]  ;;  %5410 = vmatprep.subr.bf16.mxu1 %v8689_v57 }
 0x181   : > { %8731 = vst [vmem:[#allocation24_spill] sm:$0xff] %v7654_v9  ;;  %8732 = vst [vmem:[#allocation14_spill] sm:$0xff] %v7656_v62  ;;  %v3258_v28 = vand.u32 4294901760, %v3257_v23  ;;  %v3265_v14 = vand.u32 4294901760, %v3264_v15  ;;  %v3271_v42 = vsub.f32 %v7604_v40, %v8418_v50  ;;  %v3278_v48 = vsub.f32 %v7606_v37, %v8419_v21  ;;  %v394_v23 = vld [vmem:[%s5994_s26 + $0x3c0] sm:$0xff] }
 0x182   : > { %8733 = vst [vmem:[#allocation16_spill] sm:$0xff] %v7662_v5  ;;  %v7681_v31 = vpack.c.bf16 %v3045_v36, %v3042_v32  ;;  %v3099_v58 = vand.u32 4294901760, %v393_v17  ;;  %v8425_v11 = vand.u32 4294901760, %v7650_v60  ;;  %5384 = vmatpush3.bf16.msra.mxu0 %v7562_v45  ;;  %v7687_v15 = vsub.f32 %v374_v18, %v3042_v32 }
 0x183   : > { %v7689_v50 = vsub.f32 %v375_v3, %v3045_v36  ;;  %v3146_v21 = vand.u32 4294901760, %v3145_v38  ;;  %v7692_v49 = vsub.f32 %v434_v26, %v7662_v5  ;;  %5386 = vmatprep.subr.bf16.mxu0 %v7568_v20  ;;  %v3153_v57 = vand.u32 4294901760, %v3152_v22  ;;  %5412 = vmatpush3.bf16.msra.mxu1 %v7140_v63 }
 0x184   : > { %8734 = vst [vmem:[#allocation20_spill] sm:$0xff] %v7681_v31  ;;  %v7695_v41 = vsub.f32 %v392_v24, %v3096_v44  ;;  %v3048_v53 = vand.u32 4294901760, %v376_v56  ;;  %v3051_v47 = vand.u32 4294901760, %v377_v13  ;;  %v4115_v1 = vpop.f32.mrb[2].mxu0  ;;  %v7699_v45 = vpack.c.bf16 %v3265_v14, %v3258_v28  ;;  %5414 = vmatprep.subr.bf16.mxu1 %v8691_v61 }
 0x185   : > { %8735 = vst [vmem:[#allocation18_spill] sm:$0xff] %v7689_v50  ;;  %v3272_v18 = vand.u32 4294901760, %v3271_v42  ;;  %v3279_v3 = vand.u32 4294901760, %v3278_v48  ;;  %v3102_v32 = vand.u32 4294901760, %v394_v23  ;;  %v4116_v36 = vpop.f32.mrb[3].mxu0  ;;  %v7702_v26 = vpack.c.bf16 %v3099_v58, %v3096_v44 }
 0x186   : > { %8736 = vst [vmem:[#allocation19_spill] sm:$0xff] %v7695_v41  ;;  %v3159_v20 = vsub.f32 %v7650_v60, %v8425_v11  ;;  %v8738_v24 = vand.u32 4294901760, %v7652_v34  ;;  %v8427_v63 = vand.u32 4294901760, %v7664_v30  ;;  %v4117_v22 = vadd.f32 %v4116_v36, %v4115_v1  ;;  %5388 = vmatpush3.bf16.msra.mxu0 %v7574_v54 }
 0x187   : > { %8737 = vst [vmem:[#allocation15_spill] sm:$0xff] %v7702_v26  ;;  %v3105_v28 = vand.u32 4294901760, %v395_v8  ;;  %v8426_v61 = vand.u32 4294901760, %v7666_v43  ;;  %v8428_v44 = vand.u32 4294901760, %v7692_v49  ;;  %5390 = vmatprep.subr.bf16.mxu0 %v7590_v27  ;;  %v7715_v14 = vpack.c.bf16 %v3153_v57, %v3146_v21  ;;  %5416 = vmatpush3.bf16.msra.mxu1 %v7194_v6  ;;  %v378_v27 = vld [vmem:[%s5994_s26 + $0x340] sm:$0xff]  ;;  %v379_v21 = vld [vmem:[%s5994_s26 + $0x348] sm:$0xff] }
 0x188   : > { %v3166_v38 = vsub.f32 %v7652_v34, %v8738_v24  ;;  %v7717_v42 = vsub.f32 %v393_v17, %v3099_v58  ;;  %v7719_v48 = vpack.c.bf16 %v3051_v47, %v3048_v53  ;;  %v7721_v24 = vsub.f32 %v376_v56, %v3048_v53  ;;  %5418 = vmatprep.subr.bf16.mxu1 %v7224_v10  ;;  %v396_v58 = vld [vmem:[%s5994_s26 + $0x3d0] sm:$0xff] }
 0x189   : > { %v922_v1 = vadd.f32 %v4117_v22, %v7493_v39  ;;  %v7725_v54 = vpack.c.bf16 %v3279_v3, %v3272_v18  ;;  %v7727_v36 = vsub.f32 %v377_v13, %v3051_v47  ;;  %v7729_v11 = vsub.f32 %v394_v23, %v3102_v32  ;;  %v4150_v47 = vpop.f32.mrb[2].mxu1 }
 0x18a   : > { %8739 = vst [vmem:[#allocation26_spill] sm:$0xff] %v7719_v48  ;;  %8740 = vst [vmem:[#allocation21_spill] sm:$0xff] %v7721_v24  ;;  %v3160_v17 = vand.u32 4294901760, %v3159_v20  ;;  %v3285_v53 = vsub.f32 %v7664_v30, %v8427_v63  ;;  %v8429_v39 = vand.u32 4294901760, %v7687_v15  ;;  %5392 = vmatpush3.bf16.msra.mxu0 %v7596_v12  ;;  %v3167_v56 = vand.u32 4294901760, %v3166_v38  ;;  %v4151_v57 = vpop.f32.mrb[3].mxu1 }
 0x18b   : > { %8741 = vst [vmem:[#allocation12_spill] sm:$0xff] %v7727_v36  ;;  %8742 = vst [vmem:[#allocation25_spill] sm:$0xff] %v7729_v11  ;;  %v7740_v13 = vpack.c.bf16 %v3105_v28, %v3102_v32  ;;  %v3292_v10 = vsub.f32 %v7666_v43, %v8426_v61  ;;  %v3128_v23 = vsub.f32 %v7692_v49, %v8428_v44  ;;  %5394 = vmatprep.subr.bf16.mxu0 %v7616_v4  ;;  %v397_v20 = vld [vmem:[%s5994_s26 + $0x3d8] sm:$0xff]  ;;  %v8745_v44 = vld [vmem:[#allocation28_spill] sm:$0xff] }
 0x18c   : > { %v3054_v18 = vand.u32 4294901760, %v378_v27  ;;  %v3057_v3 = vand.u32 4294901760, %v379_v21  ;;  %v4152_v38 = vadd.f32 %v4151_v57, %v4150_v47  ;;  %5420 = vmatpush3.bf16.msra.mxu1 %v7377_v29  ;;  %v7754_v22 = vsub.f32 %v395_v8, %v3105_v28  ;;  %v7769_v57 = vld [vmem:[%s5994_s26 + $0x350] sm:$0xff]  ;;  %v7788_v63 = vld [vmem:[%s5994_s26 + $0x358] sm:$0xff] }
 0x18d   : > { %8743 = vst [vmem:[#allocation17_spill] sm:$0xff] %v7740_v13  ;;  %v8434_v61 = vand.u32 4294901760, %v7721_v24  ;;  %5422 = vmatprep.subr.bf16.mxu1 %v8745_v44  ;;  %v3286_v4 = vand.u32 4294901760, %v3285_v53  ;;  %v3173_v6 = vsub.f32 %v7687_v15, %v8429_v39  ;;  %v8746_v12 = vand.u32 4294901760, %v7689_v50 }
 0x18e   : > { %8744 = vst [vmem:[#allocation11_spill] sm:$0xff] %v7754_v22  ;;  %v3108_v47 = vand.u32 4294901760, %v396_v58  ;;  %v7765_v29 = vadd.f32 %v4152_v38, %v922_v1  ;;  %5396 = vmatpush3.bf16.msra.mxu0 %v7622_v51  ;;  %v3293_v8 = vand.u32 4294901760, %v3292_v10  ;;  %v3111_v28 = vand.u32 4294901760, %v397_v20 }
 0x18f   : > { %v3180_v32 = vsub.f32 %v7689_v50, %v8746_v12  ;;  %v3129_v44 = vand.u32 4294901760, %v3128_v23  ;;  %5430 = vmatprep.subr.bf16.mxu0 %v7632_v2  ;;  %v7772_v53 = vpack.c.bf16 %v3167_v56, %v3160_v17  ;;  %v7774_v39 = vpack.c.bf16 %v3057_v3, %v3054_v18  ;;  %v8754_v50 = vld [vmem:[#allocation29_spill] sm:$0xff] }
 0x190   : > { %v8748_v12 = vand.u32 4294901760, %v7695_v41  ;;  %v8749_v38 = vand.u32 4294901760, %v7717_v42  ;;  %5424 = vmatpush3.bf16.msra.mxu1 %v7406_v55  ;;  %v7783_v10 = vsub.f32 %v378_v27, %v3054_v18  ;;  %v7785_v23 = vsub.f32 %v379_v21, %v3057_v3  ;;  %v7800_v21 = vld [vmem:[%s5994_s26 + $0x3e0] sm:$0xff]  ;;  %v7803_v18 = vld [vmem:[%s5994_s26 + $0x3e8] sm:$0xff] }
 0x191   : > { %8747 = vst [vmem:[#allocation28_spill] sm:$0xff] %v7774_v39  ;;  %v3187_v17 = vsub.f32 %v7721_v24, %v8434_v61  ;;  %v8752_v56 = vand.u32 4294901760, %v7727_v36  ;;  %5426 = vmatprep.subr.bf16.mxu1 %v8754_v50  ;;  %v3181_v55 = vand.u32 4294901760, %v3180_v32  ;;  %v7807_v61 = vpack.c.bf16 %v3293_v8, %v3286_v4 }
 0x192   : > { %v3299_v1 = vsub.f32 %v7695_v41, %v8748_v12  ;;  %v3306_v51 = vsub.f32 %v7717_v42, %v8749_v38  ;;  %8750 = vst [vmem:[#allocation30_spill] sm:$0xff] %v7783_v10  ;;  %8751 = vst [vmem:[#allocation31_spill] sm:$0xff] %v7785_v23  ;;  %v8753_v41 = vld [vmem:[#allocation27_spill] sm:$0xff]  ;;  %v3174_v38 = vand.u32 4294901760, %v3173_v6  ;;  %v8437_v50 = vand.u32 4294901760, %v7754_v22 }
 0x193   : > { %v3194_v12 = vsub.f32 %v7727_v36, %v8752_v56  ;;  %2920 = vmatmul.mubr.f32.vlgmr.msra.gmra.mrb[16].mxu0 %v8753_v41  ;;  %v7809_v56 = vpack.c.bf16 %v3111_v28, %v3108_v47  ;;  %v7811_v36 = vsub.f32 %v396_v58, %v3108_v47  ;;  %v7815_v6 = vsub.f32 %v397_v20, %v3111_v28  ;;  %v7847_v47 = vld [vmem:[%s5994_s26 + $0x3f8] sm:$0xff] }
 0x194   : > { %5432 = vmatpush3.bf16.msra.mxu0 %v7634_v7  ;;  %3130 = vmatprep.mubr.f32.mxu0 %v3129_v44  ;;  %v3300_v32 = vand.u32 4294901760, %v3299_v1  ;;  %v3307_v27 = vand.u32 4294901760, %v3306_v51  ;;  %v3188_v4 = vand.u32 4294901760, %v3187_v17  ;;  %v7822_v44 = vld [vmem:[%s5994_s26 + $0x360] sm:$0xff]  ;;  %v5471_v20 = vpack.c.bf16 %v3181_v55, %v3174_v38  ;;  %v7834_v17 = vld [vmem:[%s5994_s26 + $0x368] sm:$0xff]  ;;  %v8759_v58 = vld [vmem:[#allocation13_spill] sm:$0xff] }
 0x195   : > { %8755 = vst [vmem:[#allocation27_spill] sm:$0xff] %v7811_v36  ;;  %5434 = vmatprep.subr.bf16.mxu0 %v7636_v25  ;;  %8756 = vst [vmem:[#allocation29_spill] sm:$0xff] %v7815_v6  ;;  %5428 = vmatpush3.bf16.msra.mxu1 %v7425_v19  ;;  %v3195_v8 = vand.u32 4294901760, %v3194_v12  ;;  %v8757_v28 = vand.u32 4294901760, %v7769_v57  ;;  %v8758_v19 = vand.u32 4294901760, %v7729_v11  ;;  %v8763_v55 = vand.u32 4294901760, %v7788_v63 }
 0x196   : > { %5462 = vmatprep.subr.bf16.mxu1 %v7699_v45  ;;  %v3320_v45 = vsub.f32 %v7754_v22, %v8437_v50  ;;  %v8760_v3 = vand.u32 2147483647, %v8759_v58  ;;  %v5473_v50 = vpack.c.bf16 %v3307_v27, %v3300_v32  ;;  %v8765_v27 = vand.u32 4294901760, %v7803_v18 }
 0x197   : > { %v7828_v1 = vsub.f32 %v7769_v57, %v8757_v28  ;;  %v3313_v51 = vsub.f32 %v7729_v11, %v8758_v19  ;;  %v7844_v28 = vld [vmem:[%s5994_s26 + $0x3f0] sm:$0xff]  ;;  %v7861_v38 = vsub.f32 %v7788_v63, %v8763_v55  ;;  %v7866_v58 = vpack.c.bf16 %v3195_v8, %v3188_v4 }
 0x198   : > { %5436 = vmatpush3.bf16.msra.mxu0 %v7654_v9  ;;  %vm7852_vm0 = vcmp.lt.f32.partialorder %v8760_v3, 0.0004427343  ;;  %3024 = vmatmul.mubr.f32.vlgmr.msra.gmra.mrb[16].mxu1 %v8753_v41  ;;  %v8764_v41 = vand.u32 4294901760, %v7800_v21  ;;  %v7876_v32 = vsub.f32 %v7803_v18, %v8765_v27  ;;  %v7884_v8 = vld [vmem:[%s5994_s26 + $0x370] sm:$0xff]  ;;  %v8766_v9 = vsub.s32 6, %v8719_v0 }
 0x199   : > { %5438 = vmatprep.subr.bf16.mxu0 %v7656_v62  ;;  %5464 = vmatpush3.bf16.msra.mxu1 %v7715_v14  ;;  %v3314_v3 = vand.u32 4294901760, %v3313_v51  ;;  %v5679_v19 = vld [vmem:[%s5986_s17] sm:$0xff]  ;;  %v3321_v55 = vand.u32 4294901760, %v3320_v45  ;;  %v8768_v51 = vand.u32 4294901760, %v7785_v23  ;;  %v8769_v4 = vand.u32 4294901760, %v7811_v36 }
 0x19a   : > { %v7871_v62 = vsub.f32 %v7800_v21, %v8764_v41  ;;  %3366 = vmatprep.mubr.f32.mxu1 %v7662_v5  ;;  %5466 = vmatprep.subr.bf16.mxu1 %v7725_v54  ;;  %v7887_v41 = vld [vmem:[%s5994_s26 + $0x378] sm:$0xff]  ;;  %v430_v27 = vrot.slane %v5679_v19, %v8766_v9  ;;  %v8767_v5 = vand.u32 4294901760, %v7783_v10  ;;  %v8770_v11 = vand.u32 4294901760, %v7822_v44 }
 0x19b   : > { %v3208_v14 = vsub.f32 %v7785_v23, %v8768_v51  ;;  %v3327_v22 = vsub.f32 %v7811_v36, %v8769_v4  ;;  %v8771_v45 = vand.u32 4294901760, %v7815_v6  ;;  %v8772_v51 = vand.u32 4294901760, %v7834_v17 }
 0x19c   : > { %5440 = vmatpush3.bf16.msra.mxu0 %v7681_v31  ;;  %v3201_v54 = vsub.f32 %v7783_v10, %v8767_v5  ;;  %v7906_v9 = vsub.f32 %v7822_v44, %v8770_v11  ;;  %v5477_v11 = vpack.c.bf16 %v3321_v55, %v3314_v3 }
 0x19d   : > { %5442 = vmatprep.subr.bf16.mxu0 %v7702_v26  ;;  %v3334_v19 = vsub.f32 %v7815_v6, %v8771_v45  ;;  %5468 = vmatpush3.bf16.msra.mxu1 %v7772_v53  ;;  %v7917_v4 = vsub.f32 %v7834_v17, %v8772_v51  ;;  %v8773_v45 = vand.u32 4294901760, %v7844_v28  ;;  %v8774_v53 = vand.u32 4294901760, %v7847_v47 }
 0x19e   : > { %5470 = vmatprep.subr.bf16.mxu1 %v7807_v61  ;;  %v7933_v51 = vand.u32 4294901760, %v430_v27  ;;  %v3202_v36 = vand.u32 4294901760, %v3201_v54  ;;  %v3209_v6 = vand.u32 4294901760, %v3208_v14  ;;  %v3328_v61 = vand.u32 4294901760, %v3327_v22 }
 0x19f   : > { %v7926_v5 = vsub.f32 %v7844_v28, %v8773_v45  ;;  %v7931_v31 = vsub.f32 %v7847_v47, %v8774_v53  ;;  %v3335_v23 = vand.u32 4294901760, %v3334_v19  ;;  %v8775_v45 = vand.u32 4294901760, %v7828_v1 }
 0x1a0   : > { %5444 = vmatpush3.bf16.msra.mxu0 %v7719_v48  ;;  %v8776_v53 = vand.u32 4294901760, %v7861_v38  ;;  %v8777_v26 = vand.u32 4294901760, %v7884_v8  ;;  %v8778_v22 = vand.u32 4294901760, %v7887_v41  ;;  %v8779_v14 = vand.u32 4294901760, %v7871_v62 }
 0x1a1   : > { %5446 = vmatprep.subr.bf16.mxu0 %v7740_v13  ;;  %v3215_v10 = vsub.f32 %v7828_v1, %v8775_v45  ;;  %5472 = vmatpush3.bf16.msra.mxu1 %v5471_v20  ;;  %v7960_v45 = vsub.f32 %v430_v27, %v7933_v51  ;;  %v8780_v20 = vand.u32 4294901760, %v7876_v32  ;;  %v8783_v27 = vand.u32 4294901760, %v7788_v63 }
 0x1a2   : > { %v3222_v24 = vsub.f32 %v7861_v38, %v8776_v53  ;;  %v7948_v3 = vsub.f32 %v7884_v8, %v8777_v26  ;;  %v7953_v55 = vsub.f32 %v7887_v41, %v8778_v22  ;;  %v3341_v54 = vsub.f32 %v7871_v62, %v8779_v14  ;;  %5474 = vmatprep.subr.bf16.mxu1 %v5473_v50  ;;  %v8781_v22 = vld [vmem:[#allocation22_spill] sm:$0xff] }
 0x1a3   : > { %v3348_v26 = vsub.f32 %v7876_v32, %v8780_v20  ;;  %v213_v13 = vsel %vm7852_vm0, %v8781_v22, %v7582_v52  ;;  %v8782_v50 = vand.u32 4294901760, %v7769_v57  ;;  %v8784_v19 = vand.u32 4294901760, %v7800_v21 }
 0x1a4   : > { %5448 = vmatpush3.bf16.msra.mxu0 %v7774_v39  ;;  %v8785_v20 = vand.u32 4294901760, %v7803_v18  ;;  %v5479_v25 = vpack.c.bf16 %v3209_v6, %v3202_v36  ;;  %v5481_v48 = vpack.c.bf16 %v3335_v23, %v3328_v61  ;;  %v3216_v12 = vand.u32 4294901760, %v3215_v10  ;;  %v4185_v39 = vpop.f32.mrb[4].mxu0 }
 0x1a5   : > { %v7976_v14 = vpack.c.bf16 %v8783_v27, %v8782_v50  ;;  %5450 = vmatprep.subr.bf16.mxu0 %v7809_v56  ;;  %v3223_v52 = vand.u32 4294901760, %v3222_v24  ;;  %v8786_v22 = vand.u32 4294901760, %v7906_v9  ;;  %5476 = vmatpush3.bf16.msra.mxu1 %v7866_v58  ;;  %v3342_v63 = vand.u32 4294901760, %v3341_v54  ;;  %v4186_v6 = vpop.f32.mrb[5].mxu0 }
 0x1a6   : > { %v7982_v53 = vpack.c.bf16 %v8785_v20, %v8784_v19  ;;  %v8787_v21 = vand.u32 4294901760, %v7917_v4  ;;  %v8471_v19 = vand.u32 4294901760, %v7948_v3  ;;  %v8470_v36 = vand.u32 4294901760, %v7953_v55  ;;  %5478 = vmatprep.subr.bf16.mxu1 %v5477_v11 }
 0x1a7   : > { %v3229_v57 = vsub.f32 %v7906_v9, %v8786_v22  ;;  %v8472_v24 = vand.u32 4294901760, %v7960_v45  ;;  %v3349_v10 = vand.u32 4294901760, %v3348_v26  ;;  %v8788_v23 = vand.u32 4294901760, %v7926_v5 }
 0x1a8   : > { %v3236_v18 = vsub.f32 %v7917_v4, %v8787_v21  ;;  %v8789_v58 = vand.u32 4294901760, %v7931_v31  ;;  %v4187_v50 = vadd.f32 %v4186_v6, %v4185_v39  ;;  %5452 = vmatpush3.bf16.msra.mxu0 %v7976_v14  ;;  %v8790_v27 = vand.u32 4294901760, %v7822_v44 }
 0x1a9   : > { %v3355_v61 = vsub.f32 %v7926_v5, %v8788_v23  ;;  %v8791_v20 = vand.u32 4294901760, %v7834_v17  ;;  %v8792_v11 = vmax.f32 %v7042_v33, 0.0  ;;  %5454 = vmatprep.subr.bf16.mxu0 %v7982_v53  ;;  %v8793_v21 = vand.u32 4294901760, %v7844_v28  ;;  %5480 = vmatpush3.bf16.msra.mxu1 %v5479_v25  ;;  %v4220_v25 = vpop.f32.mrb[4].mxu1 }
 0x1aa   : > { %v3362_v54 = vsub.f32 %v7931_v31, %v8789_v58  ;;  %v8794_v23 = vand.u32 4294901760, %v7847_v47  ;;  %v5483_v39 = vpack.c.bf16 %v3223_v52, %v3216_v12  ;;  %v3230_v6 = vand.u32 4294901760, %v3229_v57  ;;  %5482 = vmatprep.subr.bf16.mxu1 %v5481_v48 }
 0x1ab   : > { %v8006_v22 = vpack.c.bf16 %v8791_v20, %v8790_v27  ;;  %v8010_v26 = vadd.f32 %v213_v13, %v8792_v11  ;;  %v1198_v44 = vadd.f32 %v4187_v50, %v7765_v29  ;;  %v3237_v17 = vand.u32 4294901760, %v3236_v18  ;;  %v4221_v50 = vpop.f32.mrb[5].mxu1 }
 0x1ac   : > { %v8017_v58 = vpack.c.bf16 %v8794_v23, %v8793_v21  ;;  %v3243_v33 = vsub.f32 %v7948_v3, %v8471_v19  ;;  %v3250_v13 = vsub.f32 %v7953_v55, %v8470_v36  ;;  %v3134_v47 = vsub.f32 %v7960_v45, %v8472_v24 }
 0x1ad   : > { %v5485_v28 = vpack.c.bf16 %v3349_v10, %v3342_v63  ;;  %v3356_v12 = vand.u32 4294901760, %v3355_v61  ;;  %v3363_v52 = vand.u32 4294901760, %v3362_v54  ;;  %5456 = vmatpush3.bf16.msra.mxu0 %v8006_v22  ;;  %v8795_v29 = vand.u32 4294901760, %v7884_v8  ;;  %5484 = vmatpush3.bf16.msra.mxu1 %v5483_v39 }
 0x1ae   : > { %v8796_v57 = vand.u32 4294901760, %v7887_v41  ;;  %5458 = vmatprep.subr.bf16.mxu0 %v8017_v58  ;;  %v5493_v48 = vpack.c.bf16 %v7543_v46, %v7540_v16  ;;  %v4222_v27 = vadd.f32 %v4221_v50, %v4220_v25  ;;  %v5487_v63 = vpack.c.bf16 %v3237_v17, %v3230_v6 }
 0x1af   : > { %v3244_v10 = vand.u32 4294901760, %v3243_v33  ;;  %v3251_v61 = vand.u32 4294901760, %v3250_v13  ;;  %v8797_v54 = vsub.s32 1, %v8719_v0  ;;  %v3135_v8 = vand.u32 4294901760, %v3134_v47  ;;  %5486 = vmatprep.subr.bf16.mxu1 %v5485_v28 }
 0x1b0   : > { %v8034_v18 = vpack.c.bf16 %v8796_v57, %v8795_v29  ;;  %v5489_v41 = vpack.c.bf16 %v3363_v52, %v3356_v12  ;;  %v8042_v11 = vadd.f32 %v4222_v27, %v1198_v44  ;;  %v5495_v21 = vpack.c.bf16 %v7599_v59, %v7577_v35 }
 0x1b1   : > { %v223_v20 = vrot.slane %v8010_v26, %v8797_v54  ;;  %v8798_v23 = vsub.s32 0, %v8719_v0  ;;  %v8799_v6 = vsub.s32 2, %v8719_v0  ;;  %v5497_v33 = vpack.c.bf16 %v7606_v37, %v7604_v40  ;;  %5488 = vmatpush3.bf16.msra.mxu1 %v5487_v63 }
 0x1b2   : > { %5460 = vmatpush3.bf16.msra.mxu0 %v8034_v18  ;;  %v8800_v44 = vsub.s32 3, %v8719_v0  ;;  %v5491_v47 = vpack.c.bf16 %v3251_v61, %v3244_v10  ;;  %5490 = vmatprep.subr.bf16.mxu1 %v5489_v41  ;;  %v8801_v28 = vsub.s32 4, %v8719_v0  ;;  %v5499_v57 = vpack.c.bf16 %v7652_v34, %v7650_v60  ;;  %v8804_v41 = vld [vmem:[#allocation18_spill] sm:$0xff] }
 0x1b3   : > { %v219_v39 = vrot.slane %v8010_v26, %v8798_v23  ;;  %v227_v17 = vrot.slane %v8010_v26, %v8799_v6  ;;  %5494 = vmatprep.subr.bf16.mxu0 %v5493_v48  ;;  %v258_v25 = vsel %vm256_vm1, %v223_v20, 0.0  ;;  %v5501_v48 = vpack.c.bf16 %v7666_v43, %v7664_v30 }
 0x1b4   : > { %v231_v13 = vrot.slane %v8010_v26, %v8800_v44  ;;  %v235_v12 = vrot.slane %v8010_v26, %v8801_v28  ;;  %v8802_v27 = vsub.s32 5, %v8719_v0  ;;  %v8803_v54 = vsub.s32 6, %v8719_v0  ;;  %v8808_v28 = vld [vmem:[#allocation23_spill] sm:$0xff] }
 0x1b5   : > { %3136 = vmatmul.mubr.f32.vlgmr.msra.gmra.mrb[18].mxu0 %v3135_v8  ;;  %v257_v52 = vsel %vm256_vm1, %v219_v39, 0.0  ;;  %v260_v29 = vsel %vm256_vm1, %v227_v17, 0.0  ;;  %5492 = vmatpush3.bf16.msra.mxu1 %v5491_v47  ;;  %v8805_v39 = vld [vmem:[#allocation19_spill] sm:$0xff]  ;;  %v8806_v17 = vsub.s32 7, %v8719_v0  ;;  %v8811_v0 = vld [vmem:[#allocation25_spill] sm:$0xff] }
 0x1b6   : > { %5496 = vmatpush3.bf16.msra.mxu0 %v5495_v21  ;;  %3503 = vmatprep.mubr.f32.mxu0 %v7692_v49  ;;  %v259_v50 = vadd.f32 %v258_v25, %v257_v52  ;;  %v239_v63 = vrot.slane %v8010_v26, %v8802_v27  ;;  %v262_v10 = vsel %vm256_vm1, %v231_v13, 0.0  ;;  %v243_v20 = vrot.slane %v8010_v26, %v8803_v54  ;;  %v8809_v52 = vld [vmem:[#allocation21_spill] sm:$0xff]  ;;  %v8810_v25 = vld [vmem:[#allocation12_spill] sm:$0xff] }
 0x1b7   : > { %5498 = vmatprep.subr.bf16.mxu0 %v5497_v33  ;;  %5526 = vmatprep.subr.bf16.mxu1 %v7632_v2  ;;  %v264_v8 = vsel %vm256_vm1, %v235_v12, 0.0  ;;  %v5503_v21 = vpack.c.bf16 %v8804_v41, %v7687_v15  ;;  %v5505_v6 = vpack.c.bf16 %v7717_v42, %v8805_v39  ;;  %v247_v33 = vrot.slane %v8010_v26, %v8806_v17  ;;  %v8812_v26 = vld [vmem:[#allocation11_spill] sm:$0xff]  ;;  %v8813_v27 = vld [vmem:[#allocation24_spill] sm:$0xff] }
 0x1b8   : > { %v261_v61 = vadd.f32 %v260_v29, %v259_v50  ;;  %3368 = vmatmul.mubr.f32.vlgmr.msra.gmra.mrb[18].mxu1 %v7933_v51  ;;  %v266_v44 = vsel %vm256_vm1, %v239_v63, 0.0  ;;  %v8807_v13 = vand.u32 4294901760, %v7692_v49  ;;  %v268_v12 = vsel %vm256_vm1, %v243_v20, 0.0  ;;  %v8814_v63 = vld [vmem:[#allocation14_spill] sm:$0xff]  ;;  %v8820_v17 = vld [vmem:[#allocation15_spill] sm:$0xff] }
 0x1b9   : > { %5528 = vmatpush3.bf16.msra.mxu1 %v7634_v7  ;;  %v5507_v29 = vpack.c.bf16 %v8810_v25, %v8809_v52  ;;  %v5509_v50 = vpack.c.bf16 %v8812_v26, %v8811_v0 }
 0x1ba   : > { %5500 = vmatpush3.bf16.msra.mxu0 %v5499_v57  ;;  %v263_v23 = vadd.f32 %v262_v10, %v261_v61  ;;  %3610 = vmatprep.mubr.f32.mxu1 %v8807_v13  ;;  %v8815_v10 = vld [vmem:[#allocation30_spill] sm:$0xff]  ;;  %v8816_v61 = vld [vmem:[#allocation31_spill] sm:$0xff] }
 0x1bb   : > { %5502 = vmatprep.subr.bf16.mxu0 %v5501_v48  ;;  %5530 = vmatprep.subr.bf16.mxu1 %v8808_v28  ;;  %v270_v48 = vsel %vm256_vm1, %v247_v33, 0.0  ;;  %v5511_v54 = vpack.c.bf16 %v8816_v61, %v8815_v10  ;;  %v5515_v33 = vpack.c.bf16 %v7861_v38, %v7828_v1 }
 0x1bc   : > { %v265_v47 = vadd.f32 %v264_v8, %v263_v23  ;;  %v8817_v8 = vld [vmem:[#allocation27_spill] sm:$0xff] }
 0x1bd   : > { %5532 = vmatpush3.bf16.msra.mxu1 %v8813_v27 }
 0x1be   : > { %5504 = vmatpush3.bf16.msra.mxu0 %v5503_v21  ;;  %v267_v57 = vadd.f32 %v266_v44, %v265_v47  ;;  %5534 = vmatprep.subr.bf16.mxu1 %v8814_v63  ;;  %v8818_v21 = vld [vmem:[#allocation29_spill] sm:$0xff]  ;;  %v5517_v44 = vpack.c.bf16 %v7876_v32, %v7871_v62  ;;  %v8821_v47 = vld [vmem:[#allocation26_spill] sm:$0xff] }
 0x1bf   : > { %5506 = vmatprep.subr.bf16.mxu0 %v5505_v6  ;;  %v5513_v23 = vpack.c.bf16 %v8818_v21, %v8817_v8  ;;  %v8819_v6 = vld [vmem:[#allocation20_spill] sm:$0xff] }
 0x1c0   : > { %v269_v49 = vadd.f32 %v268_v12, %v267_v57 }
 0x1c1   : > { %5536 = vmatpush3.bf16.msra.mxu1 %v8819_v6 }
 0x1c2   : > { %5508 = vmatpush3.bf16.msra.mxu0 %v5507_v29  ;;  %v271_v20 = vadd.f32 %v270_v48, %v269_v49  ;;  %5538 = vmatprep.subr.bf16.mxu1 %v8820_v17  ;;  %v8822_v29 = vld [vmem:[#allocation17_spill] sm:$0xff]  ;;  %v5521_v48 = vpack.c.bf16 %v7931_v31, %v7926_v5 }
 0x1c3   : > { %5510 = vmatprep.subr.bf16.mxu0 %v5509_v50  ;;  %v5519_v50 = vpack.c.bf16 %v7917_v4, %v7906_v9 }
 0x1c4   : > { %272 = vadd.xlane.f32.xlu0 %v271_v20  ;;  %v4255_v13 = vpop.f32.mrb[6].mxu0 }
 0x1c5   : > { %5540 = vmatpush3.bf16.msra.mxu1 %v8821_v47  ;;  %v4256_v12 = vpop.f32.mrb[7].mxu0 }
 0x1c6   : > { %5512 = vmatpush3.bf16.msra.mxu0 %v5511_v54  ;;  %5542 = vmatprep.subr.bf16.mxu1 %v8822_v29  ;;  %v4257_v57 = vadd.f32 %v4256_v12, %v4255_v13  ;;  %v8823_v54 = vld [vmem:[#allocation28_spill] sm:$0xff] }
 0x1c7   : > { %5514 = vmatprep.subr.bf16.mxu0 %v5513_v23  ;;  %v5523_v23 = vpack.c.bf16 %v7953_v55, %v7948_v3 }
 0x1c8   : > { %v1414_v49 = vadd.f32 %v4257_v57, %v8042_v11  ;;  %v8826_v57 = vand.u32 4294901760, %v7577_v35  ;;  %v8831_v35 = vand.u32 4294901760, %v7652_v34  ;;  %v8837_v34 = vand.u32 4294901760, %v7960_v45 }
 0x1c9   : > { %5544 = vmatpush3.bf16.msra.mxu1 %v8823_v54  ;;  %v4290_v20 = vpop.f32.mrb[6].mxu1 }
 0x1ca   : > { %5516 = vmatpush3.bf16.msra.mxu0 %v5515_v33  ;;  %5546 = vmatprep.subr.bf16.mxu1 %v7809_v56  ;;  %v4291_v13 = vpop.f32.mrb[7].mxu1  ;;  %v8824_v33 = vand.u32 4294901760, %v7540_v16  ;;  %v8829_v16 = vand.u32 4294901760, %v7606_v37  ;;  %v8834_v37 = vand.u32 4294901760, %v7666_v43 }
 0x1cb   : > { %5518 = vmatprep.subr.bf16.mxu0 %v5517_v44  ;;  %v8825_v44 = vand.u32 4294901760, %v7543_v46  ;;  %v4292_v36 = vadd.f32 %v4291_v13, %v4290_v20  ;;  %v8830_v46 = vand.u32 4294901760, %v7650_v60  ;;  %v8836_v60 = vand.u32 4294901760, %v8804_v41 }
 0x1cd   : > { %v5557_v12 = vpack.c.bf16 %v8825_v44, %v8824_v33  ;;  %5548 = vmatpush3.bf16.msra.mxu1 %v7976_v14  ;;  %v1646_v11 = vadd.f32 %v4292_v36, %v1414_v49  ;;  %v5563_v36 = vpack.c.bf16 %v8831_v35, %v8830_v46  ;;  %v8854_v33 = vand.u32 4294901760, %v7926_v5 }
 0x1ce   : > { %5520 = vmatpush3.bf16.msra.mxu0 %v5519_v50  ;;  %5550 = vmatprep.subr.bf16.mxu1 %v7982_v53  ;;  %v8827_v50 = vand.u32 4294901760, %v7599_v59  ;;  %v8832_v59 = vld [vmem:[#allocation16_spill] sm:$0xff] }
 0x1cf   : > { %5522 = vmatprep.subr.bf16.mxu0 %v5521_v48  ;;  %v8828_v48 = vand.u32 4294901760, %v7604_v40  ;;  %v8833_v40 = vand.u32 4294901760, %v7664_v30  ;;  %v8839_v30 = vand.u32 4294901760, %v7717_v42  ;;  %v8845_v42 = vand.u32 4294901760, %v8816_v61 }
 0x1d0   : > { %v5559_v19 = vpack.c.bf16 %v8827_v50, %v8826_v57 }
 0x1d1   : > { %v5561_v24 = vpack.c.bf16 %v8829_v16, %v8828_v48  ;;  %5552 = vmatpush3.bf16.msra.mxu1 %v8006_v22  ;;  %v5565_v49 = vpack.c.bf16 %v8834_v37, %v8833_v40 }
 0x1d2   : > { %5524 = vmatpush3.bf16.msra.mxu0 %v5523_v23  ;;  %5554 = vmatprep.subr.bf16.mxu1 %v8017_v58 }
 0x1d3   : > { %5558 = vmatprep.subr.bf16.mxu0 %v5557_v12 }
 0x1d5   : > { %3506 = vmatmul.mubr.f32.vlgmr.msra.gmra.mrb[20].mxu0 %v7960_v45  ;;  %5556 = vmatpush3.bf16.msra.mxu1 %v8034_v18  ;;  %v8842_v45 = vand.u32 4294901760, %v8811_v0  ;;  %v8848_v0 = vand.u32 4294901760, %v7828_v1  ;;  %v8853_v1 = vand.u32 4294901760, %v7917_v4 }
 0x1d6   : > { %5560 = vmatpush3.bf16.msra.mxu0 %v5559_v19  ;;  %3780 = vmatprep.mubr.f32.mxu0 %v8832_v59  ;;  %v8835_v19 = vand.u32 4294901760, %v7687_v15  ;;  %v8841_v15 = vand.u32 4294901760, %v8810_v25  ;;  %v8847_v25 = vand.u32 4294901760, %v8818_v21 }
 0x1d7   : > { %5562 = vmatprep.subr.bf16.mxu0 %v5561_v24  ;;  %5590 = vmatprep.subr.bf16.mxu1 %v7632_v2  ;;  %v8838_v24 = vand.u32 4294901760, %v8805_v39  ;;  %v8840_v2 = vand.u32 4294901760, %v8809_v52  ;;  %v8843_v39 = vand.u32 4294901760, %v8812_v26  ;;  %v8846_v52 = vand.u32 4294901760, %v8817_v8 }
 0x1d8   : > { %v5567_v20 = vpack.c.bf16 %v8836_v60, %v8835_v19  ;;  %3614 = vmatmul.mubr.f32.vlgmr.msra.gmra.mrb[20].mxu1 %v8837_v34  ;;  %v8849_v26 = vand.u32 4294901760, %v7861_v38 }
 0x1d9   : > { %v5569_v43 = vpack.c.bf16 %v8839_v30, %v8838_v24  ;;  %5592 = vmatpush3.bf16.msra.mxu1 %v7634_v7  ;;  %3884 = vmatprep.mubr.f32.mxu1 %v8832_v59  ;;  %v5571_v41 = vpack.c.bf16 %v8841_v15, %v8840_v2  ;;  %v5573_v23 = vpack.c.bf16 %v8843_v39, %v8842_v45  ;;  %v8844_v7 = vand.u32 4294901760, %v8815_v10 }
 0x1da   : > { %5564 = vmatpush3.bf16.msra.mxu0 %v5563_v36  ;;  %5594 = vmatprep.subr.bf16.mxu1 %v8808_v28  ;;  %v5577_v13 = vpack.c.bf16 %v8847_v25, %v8846_v52  ;;  %v8851_v10 = vand.u32 4294901760, %v7876_v32 }
 0x1db   : > { %5566 = vmatprep.subr.bf16.mxu0 %v5565_v49  ;;  %v5575_v28 = vpack.c.bf16 %v8845_v42, %v8844_v7 }
 0x1dd   : > { %5596 = vmatpush3.bf16.msra.mxu1 %v8813_v27  ;;  %v5579_v27 = vpack.c.bf16 %v8849_v26, %v8848_v0 }
 0x1de   : > { %5568 = vmatpush3.bf16.msra.mxu0 %v5567_v20  ;;  %5598 = vmatprep.subr.bf16.mxu1 %v8814_v63  ;;  %v8850_v63 = vand.u32 4294901760, %v7871_v62  ;;  %v8855_v62 = vand.u32 4294901760, %v7931_v31 }
 0x1df   : > { %5570 = vmatprep.subr.bf16.mxu0 %v5569_v43 }
 0x1e0   : > { %v5581_v61 = vpack.c.bf16 %v8851_v10, %v8850_v63  ;;  %v5585_v32 = vpack.c.bf16 %v8855_v62, %v8854_v33 }
 0x1e1   : > { %5600 = vmatpush3.bf16.msra.mxu1 %v8819_v6 }
 0x1e2   : > { %5572 = vmatpush3.bf16.msra.mxu0 %v5571_v41  ;;  %5602 = vmatprep.subr.bf16.mxu1 %v8820_v17  ;;  %v8852_v17 = vand.u32 4294901760, %v7906_v9  ;;  %v8857_v9 = vand.u32 4294901760, %v7953_v55 }
 0x1e3   : > { %5574 = vmatprep.subr.bf16.mxu0 %v5573_v23 }
 0x1e4   : > { %v4325_v8 = vpop.f32.mrb[8].mxu0  ;;  %v5583_v38 = vpack.c.bf16 %v8853_v1, %v8852_v17 }
 0x1e5   : > { %5604 = vmatpush3.bf16.msra.mxu1 %v8821_v47  ;;  %v4326_v21 = vpop.f32.mrb[9].mxu0 }
 0x1e6   : > { %5576 = vmatpush3.bf16.msra.mxu0 %v5575_v28  ;;  %5606 = vmatprep.subr.bf16.mxu1 %v8822_v29  ;;  %v4327_v6 = vadd.f32 %v4326_v21, %v4325_v8  ;;  %v8856_v29 = vand.u32 4294901760, %v7948_v3 }
 0x1e7   : > { %5578 = vmatprep.subr.bf16.mxu0 %v5577_v13 }
 0x1e8   : > { %v1784_v44 = vadd.f32 %v4327_v6, %v1646_v11  ;;  %v5587_v12 = vpack.c.bf16 %v8857_v9, %v8856_v29 }
 0x1e9   : > { %5608 = vmatpush3.bf16.msra.mxu1 %v8823_v54  ;;  %v4360_v47 = vpop.f32.mrb[8].mxu1 }
 0x1ea   : > { %5580 = vmatpush3.bf16.msra.mxu0 %v5579_v27  ;;  %5610 = vmatprep.subr.bf16.mxu1 %v7809_v56  ;;  %v4361_v4 = vpop.f32.mrb[9].mxu1 }
 0x1eb   : > { %5582 = vmatprep.subr.bf16.mxu0 %v5581_v61  ;;  %v4362_v57 = vadd.f32 %v4361_v4, %v4360_v47 }
 0x1ed   : > { %5612 = vmatpush3.bf16.msra.mxu1 %v7976_v14  ;;  %v1892_v31 = vadd.f32 %v4362_v57, %v1784_v44 }
 0x1ee   : > { %5584 = vmatpush3.bf16.msra.mxu0 %v5583_v38  ;;  %5614 = vmatprep.subr.bf16.mxu1 %v7982_v53 }
 0x1ef   : > { %5586 = vmatprep.subr.bf16.mxu0 %v5585_v32 }
 0x1f1   : > { %5616 = vmatpush3.bf16.msra.mxu1 %v8006_v22 }
 0x1f2   : > { %5588 = vmatpush3.bf16.msra.mxu0 %v5587_v12  ;;  %5618 = vmatprep.subr.bf16.mxu1 %v8017_v58 }
 0x1f5   : > { %3782 = vmatmul.mubr.f32.vlgmr.msra.gmra.mrb[22].mxu0 %v7933_v51  ;;  %5620 = vmatpush3.bf16.msra.mxu1 %v8034_v18 }
 0x1f8   : > { %3886 = vmatmul.mubr.f32.vlgmr.msra.gmra.mrb[22].mxu1 %v7933_v51 }
 0x204   : > { %v4395_v56 = vpop.f32.mrb[10].mxu0 }
 0x205   : > { %v4396_v5 = vpop.f32.mrb[11].mxu0 }
 0x206   : > { %v4397_v3 = vadd.f32 %v4396_v5, %v4395_v56 }
 0x208   : > { %v2060_v55 = vadd.f32 %v4397_v3, %v1892_v31 }
 0x209   : > { %v4430_v54 = vpop.f32.mrb[10].mxu1 }
 0x20a   : > { %v4431_v14 = vpop.f32.mrb[11].mxu1 }
 0x20b   : > { %v4432_v11 = vadd.f32 %v4431_v14, %v4430_v54 }
 0x20d   : > { %v2164_v53 = vadd.f32 %v4432_v11, %v2060_v55 }
 0x224   : > { %v4465_v50 = vpop.f32.mrb[12].mxu0 }
 0x225   : > { %v4466_v48 = vpop.f32.mrb[13].mxu0 }
 0x226   : > { %v4467_v16 = vadd.f32 %v4466_v48, %v4465_v50 }
 0x228   : > { %v2276_v22 = vadd.f32 %v4467_v16, %v2164_v53 }
 0x229   : > { %v4500_v46 = vpop.f32.mrb[12].mxu1 }
 0x22a   : > { %v4501_v35 = vpop.f32.mrb[13].mxu1 }
 0x22b   : > { %v4502_v36 = vadd.f32 %v4501_v35, %v4500_v46 }
 0x22d   : > { %v2508_v58 = vadd.f32 %v4502_v36, %v2276_v22 }
 0x244   : > { %v4535_v59 = vpop.f32.mrb[14].mxu0 }
 0x245   : > { %v4536_v18 = vpop.f32.mrb[15].mxu0 }
 0x246   : > { %v4537_v40 = vadd.f32 %v4536_v18, %v4535_v59 }
 0x248   : > { %v2646_v51 = vadd.f32 %v4537_v40, %v2508_v58 }
 0x249   : > { %v4570_v37 = vpop.f32.mrb[14].mxu1 }
 0x24a   : > { %v4571_v49 = vpop.f32.mrb[15].mxu1 }
 0x24b   : > { %v4572_v19 = vadd.f32 %v4571_v49, %v4570_v37 }
 0x24d   : > { %v2754_v60 = vadd.f32 %v4572_v19, %v2646_v51 }
 0x251   : > { %v273_v32 = vpop.xlane.xlu0 %272 }
 0x266   : > { %v4605_v20 = vpop.f32.mrb[16].mxu0 }
 0x267   : > { %v4606_v34 = vpop.f32.mrb[17].mxu0 }
 0x268   : > { %v4607_v24 = vadd.f32 %v4606_v34, %v4605_v20 }
 0x26a   : > { %v2922_v30 = vadd.f32 %v4607_v24, %v2754_v60 }
 0x26b   : > { %v4640_v43 = vpop.f32.mrb[16].mxu1 }
 0x26c   : > { %v4641_v2 = vpop.f32.mrb[17].mxu1 }
 0x26d   : > { %v4642_v15 = vadd.f32 %v4641_v2, %v4640_v43 }
 0x26f   : > { %v3026_v41 = vadd.f32 %v4642_v15, %v2922_v30 }
 0x288   : > { %v4675_v45 = vpop.f32.mrb[18].mxu0 }
 0x289   : > { %v4676_v39 = vpop.f32.mrb[19].mxu0 }
 0x28a   : > { %v4677_v23 = vadd.f32 %v4676_v39, %v4675_v45 }
 0x28b   : > { %v4710_v42 = vpop.f32.mrb[18].mxu1 }
 0x28c   : > { %v3138_v7 = vadd.f32 %v4677_v23, %v3026_v41  ;;  %v4711_v28 = vpop.f32.mrb[19].mxu1 }
 0x28d   : > { %v4712_v52 = vadd.f32 %v4711_v28, %v4710_v42 }
 0x28f   : > { %v3370_v25 = vadd.f32 %v4712_v52, %v3138_v7 }
 0x2a8   : > { %v4745_v13 = vpop.f32.mrb[20].mxu0 }
 0x2a9   : > { %v4746_v0 = vpop.f32.mrb[21].mxu0 }
 0x2aa   : > { %v4747_v26 = vadd.f32 %v4746_v0, %v4745_v13 }
 0x2ab   : > { %v4780_v63 = vpop.f32.mrb[20].mxu1 }
 0x2ac   : > { %v3508_v27 = vadd.f32 %v4747_v26, %v3370_v25  ;;  %v4781_v10 = vpop.f32.mrb[21].mxu1 }
 0x2ad   : > { %v4782_v61 = vadd.f32 %v4781_v10, %v4780_v63 }
 0x2af   : > { %v3616_v8 = vadd.f32 %v4782_v61, %v3508_v27 }
 0x2c8   : > { %v4815_v21 = vpop.f32.mrb[22].mxu0 }
 0x2c9   : > { %v4816_v6 = vpop.f32.mrb[23].mxu0 }
 0x2ca   : > { %v4817_v17 = vadd.f32 %v4816_v6, %v4815_v21 }
 0x2cb   : > { %v4850_v38 = vpop.f32.mrb[22].mxu1 }
 0x2cc   : > { %v3784_v1 = vadd.f32 %v4817_v17, %v3616_v8  ;;  %v4851_v33 = vpop.f32.mrb[23].mxu1 }
 0x2cd   : > { %v4852_v62 = vadd.f32 %v4851_v33, %v4850_v38 }
 0x2cf   : > { %v3888_v44 = vadd.f32 %v4852_v62, %v3784_v1 }
 0x2d1   : > { %v3891_v47 = vsub.f32 %v273_v32, %v3888_v44 }
 0x2d3   : > { %v3892_v29 = vmul.f32 0.0009765625, %v3891_v47 }
 0x2d5   : > { %3893 = vst [vmem:[%s198_s7] sm:$0x1] %v3892_v29 }
 0x2d6   : > { %5753 = shalt.err (!%p5750_p1)
}
 0x2d7   : > { %s5754_s6 = scalar_lea.hbm %s8217_s24, 16  ;;  %s5758_s4 = scalar_lea.hbm %s8263_s2, 32 }
 0x2d8   : > { %p5755_p11 = scmp.ne.s32.totalorder %s8217_s24, %s5754_s6  ;;  %p5759_p4 = scmp.lt.u32.totalorder %s8217_s24, %s8263_s2 }
 0x2d9   : > { %p5760_p5 = scmp.lt.u32.totalorder %s5758_s4, %s5754_s6  ;;  %p5762_p13 = scmp.lt.u32.totalorder %s5754_s6, %s8217_s24 }
 0x2da   : > { %p5756_p12 = pnand %p5755_p11, %p8858_p3 }
 0x2db   : > { %p5761_p6 = por %p5760_p5, %p5759_p4 }
 0x2dc   : > { %p5757_p2 = pneg %p5756_p12 }
 0x2dd   : > { %p5763_p7 = por %p5762_p13, %p5761_p6 }
 0x2df   : > { %p5764_p10 = pnand %p5763_p7, %p5757_p2 }
 0x2e1   : > { %5767 = shalt.err (!%p5764_p10)
}
 0x2e2   : > { %5625 = dma.vmem_to_hbm [thread:$0]  (%p8858_p3), %s8219_s14, 16, %s8217_s24, %s3895_s25  }
 0x2e3 PF: > { %s3919_s23 = sand.u32 1, %s5798_s9   ;;  %p8859_p8 = scmp.ne.s32.totalorder %s8476_s22, 0 }
 0x2e4   : > { %p8860_p9 = scmp.ge.s32.totalorder %s5810_s12, 2  ;;  %s3920_s3 = scalar_lea.sflag [#allocation4], %s3919_s23 }
 0x2e6   : > { %p5635_p0 = pnand %p8860_p9, %p8859_p8 }
 0x2e8   : > { %5793 = dma.done.wait (!%p5635_p0), %s3920_s3, 16  }
 0x2e9   : > { %5795 = vsyncadd (!%p5635_p0), %s3920_s3, 4294967280  ;;  %p18_p1 = scmp.ge.s32.totalorder %s5857_s15, 4   ;;  %s8861_s9 = smov %s5802_s10 }
 0x2ea   : > { %s8862_s10 = smov %s5806_s11  ;;  %s8863_s11 = smov %s5869_s18 }
 0x2eb   : > { %s8864_s12 = smov %s5857_s15  ;;  %20 = sbr.rel (!%p18_p1) target bundleno = 7 (0x7), region = 86 }
 0x2f2   :  { %3924 = vsyncpa [#allocation3], 1 }
 0x2f3   :  { %3926 = vsyncpa [#allocation3 + $0x1], 1 }
 0x2f4   :  { %3927 = vsyncpa [#allocation6], 1 }
 0x2f5   :  { %3929 = vsyncpa [#allocation6 + $0x1], 1 }
 0x2f6   :  { %3930 = vsyncpa [#allocation4], 1 }
 0x2f7   :  { %3932 = vsyncpa [#allocation4 + $0x1], 1 }

</bundles_post_ra>
